<compile_context>
chip_gen: v7x
topology: tpu7x:2x2x1
jax: 0.10.0
libtpu: 0.0.40
codegen_flags: <defaults>
</compile_context>

<pallas_src>
from functools import partial

import jax
import jax.numpy as jnp
from jax import lax
from jax.experimental import pallas as pl
from jax.experimental.pallas import tpu as pltpu


def covid19_kernel(T, H, Hp, Bp, x_ref, wslab_ref, misc_ref, out_ref):
    """x_ref:     (T*Bp, H)        normalized inside, batch rows zero-padded
       wslab_ref: (2*Hp + 2*H, 8*Hp)  rows [0:2Hp)=Whh_bd, [2Hp:2Hp+H)=Wih_f,
                                       [2Hp+H:2Hp+2H)=Wih_b  (gate-major,
                                       direction-interleaved, zero-padded cols)
       misc_ref:  (8, 8*Hp)           row0=bias, row1[:2Hp]=lin_w, row2[0,0]=lin_b
       out_ref:   (Bp, 1)"""
    Hp2 = 2 * Hp          # 128: one vreg of lanes = [dir_fwd | dir_bwd]

    # ---- dropout(training=False) is identity ----

    # ---- L2 normalize once over all rows (one reduce + one rsqrt pass) ----
    x = x_ref[...]                                        # (T*Bp, H)
    ss = jnp.sum(x * x, axis=-1, keepdims=True)
    xn = x * lax.rsqrt(jnp.maximum(ss, 1e-24))            # == x / max(||x||,1e-12)

    # ---- static, whole-sublane-tile slices of the packed slabs (hoisted) ----
    whh   = wslab_ref[0:Hp2, :]                           # (128, 512)
    wih_f = wslab_ref[Hp2:Hp2 + H, :]                     # (32, 512) fwd columns only
    wih_b = wslab_ref[Hp2 + H:Hp2 + 2 * H, :]             # (32, 512) bwd columns only
    bias  = misc_ref[0:1, :]                              # (1, 512)
    lin_w = misc_ref[1:2, 0:Hp2]                          # (1, 128)
    lin_b = misc_ref[2:3, 0:1]                            # (1, 1)

    # ---- hoisted input projections for BOTH directions (disjoint columns) ----
    gx_f = jnp.dot(xn, wih_f, preferred_element_type=jnp.float32) + bias  # (T*Bp, 512)
    gx_b = jnp.dot(xn, wih_b, preferred_element_type=jnp.float32)         # (T*Bp, 512)

    # ---- serial bidirectional recurrence: one MXU matmul per step, unrolled ----
    h_cat = jnp.zeros((Bp, Hp2), jnp.float32)             # [h_fwd | h_bwd]
    c_cat = jnp.zeros((Bp, Hp2), jnp.float32)             # [c_fwd | c_bwd]
    for t in range(T):                                    # T=8 static -> full unroll
        rf = t * Bp                                       # fwd consumes x_t
        rb = (T - 1 - t) * Bp                             # bwd consumes x_{T-1-t}
        gates = (jnp.dot(h_cat, whh, preferred_element_type=jnp.float32)
                 + gx_f[rf:rf + Bp, :] + gx_b[rb:rb + Bp, :])   # (Bp, 512)
        # 128-lane-aligned gate blocks; sigmoid only on i/f/o, tanh on g.
        i = jax.nn.sigmoid(gates[:, 0 * Hp2:1 * Hp2])
        f = jax.nn.sigmoid(gates[:, 1 * Hp2:2 * Hp2])
        g = jnp.tanh(gates[:, 2 * Hp2:3 * Hp2])
        o = jax.nn.sigmoid(gates[:, 3 * Hp2:4 * Hp2])
        c_cat = f * c_cat + i * g
        h_cat = o * jnp.tanh(c_cat)

    # ---- Linear(2H -> 1): VPU multiply + lane reduce (no N=1 MXU pass) ----
    out_ref[...] = jnp.sum(h_cat * lin_w, axis=-1, keepdims=True) + lin_b


def covid19_forward(x, params):
    """x: (batch, seq, hidden) float32. Returns (batch, 1)."""
    B, T, H = x.shape
    Hp = 64          # padded per-direction hidden: each gate block = 1 vreg of lanes
    Bp = 8           # padded batch: one sublane tile
    assert H <= Hp and B <= Bp
    f32 = jnp.float32

    # ---- activations: permute(1,0,2), pad batch to Bp, flatten to 2-D rows ----
    x_tbh = jnp.transpose(x, (1, 0, 2)).astype(f32)                       # (T, B, H)
    x2d = jnp.zeros((T, Bp, H), f32).at[:, :B, :].set(x_tbh).reshape(T * Bp, H)

    # ---- one-time weight re-layout: gate-major, direction-interleaved, padded ----
    def place(w, direction):
        # w: (R, 4H) gate blocks [i,f,g,o] -> (R, 8*Hp); gate k of this direction
        # occupies columns [(2k+direction)*Hp : (2k+direction)*Hp + H], rest zero.
        R = w.shape[0]
        out = jnp.zeros((R, 8 * Hp), f32)
        for k in range(4):
            col = (2 * k + direction) * Hp
            out = out.at[:, col:col + H].set(w[:, k * H:(k + 1) * H])
        return out

    whh_bd = jnp.zeros((2 * Hp, 8 * Hp), f32)
    whh_bd = whh_bd.at[0:H, :].set(place(params["whh_f"], 0))
    whh_bd = whh_bd.at[Hp:Hp + H, :].set(place(params["whh_b"], 1))
    wih_f_bd = place(params["wih_f"], 0)                                  # (H, 8*Hp)
    wih_b_bd = place(params["wih_b"], 1)                                  # (H, 8*Hp)
    w_slab = jnp.concatenate([whh_bd, wih_f_bd, wih_b_bd], axis=0)        # (192, 512)

    b_row = place(params["b_f"], 0) + place(params["b_b"], 1)             # (1, 8*Hp)
    lin_w_row = jnp.zeros((1, 2 * Hp), f32)
    lin_w_row = lin_w_row.at[:, 0:H].set(params["lin_w"][:H, 0][None, :])
    lin_w_row = lin_w_row.at[:, Hp:Hp + H].set(params["lin_w"][H:, 0][None, :])
    misc = jnp.zeros((8, 8 * Hp), f32)
    misc = misc.at[0:1, :].set(b_row)
    misc = misc.at[1:2, 0:2 * Hp].set(lin_w_row)
    misc = misc.at[2, 0].set(params["lin_b"][0, 0])

    vmem = pl.BlockSpec(memory_space=pltpu.MemorySpace.VMEM)
    out_pad = pl.pallas_call(
        partial(covid19_kernel, T, H, Hp, Bp),
        out_shape=jax.ShapeDtypeStruct((Bp, 1), f32),
        in_specs=[vmem, vmem, vmem],
        out_specs=vmem,
    )(x2d, w_slab, misc)
    return out_pad[:B]


def init_params(key, hidden):
    """Deterministic init matching PyTorch shapes (uniform(-1/sqrt(H), 1/sqrt(H)))."""
    H = hidden
    k = 1.0 / (H ** 0.5)
    ks = jax.random.split(key, 11)
    u = lambda kk, shape: jax.random.uniform(kk, shape, jnp.float32, -k, k)

    # LSTM weights stored transposed: (H, 4H) with gate blocks [i, f, g, o].
    wih_f = u(ks[0], (H, 4 * H))
    whh_f = u(ks[1], (H, 4 * H))
    b_f = u(ks[2], (1, 4 * H)) + u(ks[3], (1, 4 * H))          # b_ih + b_hh
    wih_b = u(ks[4], (H, 4 * H))
    whh_b = u(ks[5], (H, 4 * H))
    b_b = u(ks[6], (1, 4 * H)) + u(ks[7], (1, 4 * H))
    # Linear(2H -> 1), stored transposed: (2H, 1)
    lin_w = u(ks[8], (2 * H, 1))
    lin_b = u(ks[9], (1, 1))

    return dict(wih_f=wih_f, whh_f=whh_f, b_f=b_f,
                wih_b=wih_b, whh_b=whh_b, b_b=b_b,
                lin_w=lin_w, lin_b=lin_b)


def ref_forward(x, params):
    """Pure-JAX reference of the PyTorch module (eval mode)."""
    H = x.shape[-1]
    nrm = jnp.sqrt(jnp.sum(x * x, axis=-1, keepdims=True))
    xn = x / jnp.maximum(nrm, 1e-12)
    xt = jnp.transpose(xn, (1, 0, 2))    # (T, B, H)
    T, B, _ = xt.shape

    def run(seq, wih, whh, b):
        h = jnp.zeros((B, H), jnp.float32)
        c = jnp.zeros((B, H), jnp.float32)
        for t in range(T):
            gates = seq[t] @ wih + h @ whh + b
            i = jax.nn.sigmoid(gates[:, 0 * H:1 * H])
            f = jax.nn.sigmoid(gates[:, 1 * H:2 * H])
            g = jnp.tanh(gates[:, 2 * H:3 * H])
            o = jax.nn.sigmoid(gates[:, 3 * H:4 * H])
            c = f * c + i * g
            h = o * jnp.tanh(c)
        return h

    h_f = run(xt, params["wih_f"], params["whh_f"], params["b_f"])
    h_b = run(xt[::-1], params["wih_b"], params["whh_b"], params["b_b"])
    h_cat = jnp.concatenate([h_f, h_b], axis=-1)
    return h_cat @ params["lin_w"] + params["lin_b"]


if __name__ == "__main__":
    B, T, H = 2, 8, 32          # batch, seq, hidden (args.hidden = 32)
    key = jax.random.PRNGKey(0)
    kx, kp = jax.random.split(key)
    x = jax.random.normal(kx, (B, T, H), jnp.float32)
    params = init_params(kp, H)

    out = covid19_forward(x, params)
    jax.block_until_ready(out)
    assert out.shape == (B, 1) and out.dtype == jnp.float32

    ref = ref_forward(x, params)
    assert jnp.allclose(out, ref, atol=1e-2, rtol=1e-2), (out, ref)
    print("KERNEL_OK")
</pallas_src>

<mosaic_0001>
module attributes {stable_mosaic.version = 11 : i64} {
  func.func @covid19_kernel(%arg0: memref<64x32xf32, #tpu.memory_space<vmem>>, %arg1: memref<192x512xf32, #tpu.memory_space<vmem>>, %arg2: memref<8x512xf32, #tpu.memory_space<vmem>>, %arg3: memref<8x1xf32, #tpu.memory_space<vmem>>) attributes {dimension_semantics = [], scalar_prefetch = 0 : i64, scratch_operands = 0 : i64, tpu.core_type = #tpu.core_type<tc>} {
    %c0 = arith.constant 0 : index
    %c0_0 = arith.constant 0 : index
    %0 = vector.load %arg0[%c0, %c0_0] : memref<64x32xf32, #tpu.memory_space<vmem>>, vector<64x32xf32>
    %1 = arith.mulf %0, %0 : vector<64x32xf32>
    %cst = arith.constant dense<0.000000e+00> : vector<64xf32>
    %2 = vector.multi_reduction <add>, %1, %cst [1] : vector<64x32xf32> to vector<64xf32>
    %3 = vector.shape_cast %2 : vector<64xf32> to vector<64x1xf32>
    %cst_1 = arith.constant 1.000000e-24 : f32
    %4 = vector.broadcast %cst_1 : f32 to vector<64x1xf32>
    %5 = arith.maximumf %3, %4 : vector<64x1xf32>
    %6 = math.rsqrt %5 : vector<64x1xf32>
    %7 = vector.broadcast %6 : vector<64x1xf32> to vector<64x32xf32>
    %8 = arith.mulf %0, %7 : vector<64x32xf32>
    %c0_2 = arith.constant 0 : index
    %c0_3 = arith.constant 0 : index
    %9 = vector.load %arg1[%c0_2, %c0_3] : memref<192x512xf32, #tpu.memory_space<vmem>>, vector<128x512xf32>
    %c128 = arith.constant 128 : index
    %c0_4 = arith.constant 0 : index
    %10 = vector.load %arg1[%c128, %c0_4] : memref<192x512xf32, #tpu.memory_space<vmem>>, vector<32x512xf32>
    %c160 = arith.constant 160 : index
    %c0_5 = arith.constant 0 : index
    %11 = vector.load %arg1[%c160, %c0_5] : memref<192x512xf32, #tpu.memory_space<vmem>>, vector<32x512xf32>
    %c0_6 = arith.constant 0 : index
    %c0_7 = arith.constant 0 : index
    %12 = vector.load %arg2[%c0_6, %c0_7] : memref<8x512xf32, #tpu.memory_space<vmem>>, vector<1x512xf32>
    %c1 = arith.constant 1 : index
    %c0_8 = arith.constant 0 : index
    %13 = vector.load %arg2[%c1, %c0_8] : memref<8x512xf32, #tpu.memory_space<vmem>>, vector<1x128xf32>
    %c2 = arith.constant 2 : index
    %c0_9 = arith.constant 0 : index
    %14 = vector.load %arg2[%c2, %c0_9] : memref<8x512xf32, #tpu.memory_space<vmem>>, vector<1x1xf32>
    %cst_10 = arith.constant dense<0.000000e+00> : vector<64x512xf32>
    %15 = tpu.matmul %8, %10, %cst_10 {dimension_numbers = #tpu.dot_dimension_numbers<[1], [0], [0], [1], [0, 0, 1, 1], [], []>} : vector<64x32xf32>, vector<32x512xf32>, vector<64x512xf32> -> vector<64x512xf32>
    %16 = vector.broadcast %12 : vector<1x512xf32> to vector<64x512xf32>
    %17 = arith.addf %15, %16 : vector<64x512xf32>
    %cst_11 = arith.constant dense<0.000000e+00> : vector<64x512xf32>
    %18 = tpu.matmul %8, %11, %cst_11 {dimension_numbers = #tpu.dot_dimension_numbers<[1], [0], [0], [1], [0, 0, 1, 1], [], []>} : vector<64x32xf32>, vector<32x512xf32>, vector<64x512xf32> -> vector<64x512xf32>
    %cst_12 = arith.constant 0.000000e+00 : f32
    %19 = vector.broadcast %cst_12 : f32 to vector<8x128xf32>
    %cst_13 = arith.constant 0.000000e+00 : f32
    %20 = vector.broadcast %cst_13 : f32 to vector<8x128xf32>
    %cst_14 = arith.constant dense<0.000000e+00> : vector<8x512xf32>
    %21 = tpu.matmul %19, %9, %cst_14 {dimension_numbers = #tpu.dot_dimension_numbers<[1], [0], [0], [1], [0, 0, 1, 1], [], []>} : vector<8x128xf32>, vector<128x512xf32>, vector<8x512xf32> -> vector<8x512xf32>
    %22 = vector.extract_strided_slice %17 {offsets = [0, 0], sizes = [8, 512], strides = [1, 1]} : vector<64x512xf32> to vector<8x512xf32>
    %23 = arith.addf %21, %22 : vector<8x512xf32>
    %24 = vector.extract_strided_slice %18 {offsets = [56, 0], sizes = [8, 512], strides = [1, 1]} : vector<64x512xf32> to vector<8x512xf32>
    %25 = arith.addf %23, %24 : vector<8x512xf32>
    %26 = vector.extract_strided_slice %25 {offsets = [0, 0], sizes = [8, 128], strides = [1, 1]} : vector<8x512xf32> to vector<8x128xf32>
    %27 = arith.negf %26 : vector<8x128xf32>
    %28 = math.exp %27 : vector<8x128xf32>
    %cst_15 = arith.constant 1.000000e+00 : f32
    %29 = vector.broadcast %cst_15 : f32 to vector<8x128xf32>
    %30 = arith.addf %29, %28 : vector<8x128xf32>
    %31 = arith.divf %29, %30 : vector<8x128xf32>
    %32 = vector.extract_strided_slice %25 {offsets = [0, 128], sizes = [8, 128], strides = [1, 1]} : vector<8x512xf32> to vector<8x128xf32>
    %33 = arith.negf %32 : vector<8x128xf32>
    %34 = math.exp %33 : vector<8x128xf32>
    %cst_16 = arith.constant 1.000000e+00 : f32
    %35 = vector.broadcast %cst_16 : f32 to vector<8x128xf32>
    %36 = arith.addf %35, %34 : vector<8x128xf32>
    %37 = arith.divf %35, %36 : vector<8x128xf32>
    %38 = vector.extract_strided_slice %25 {offsets = [0, 256], sizes = [8, 128], strides = [1, 1]} : vector<8x512xf32> to vector<8x128xf32>
    %39 = math.tanh %38 : vector<8x128xf32>
    %40 = vector.extract_strided_slice %25 {offsets = [0, 384], sizes = [8, 128], strides = [1, 1]} : vector<8x512xf32> to vector<8x128xf32>
    %41 = arith.negf %40 : vector<8x128xf32>
    %42 = math.exp %41 : vector<8x128xf32>
    %cst_17 = arith.constant 1.000000e+00 : f32
    %43 = vector.broadcast %cst_17 : f32 to vector<8x128xf32>
    %44 = arith.addf %43, %42 : vector<8x128xf32>
    %45 = arith.divf %43, %44 : vector<8x128xf32>
    %46 = arith.mulf %37, %20 : vector<8x128xf32>
    %47 = arith.mulf %31, %39 : vector<8x128xf32>
    %48 = arith.addf %46, %47 : vector<8x128xf32>
    %49 = math.tanh %48 : vector<8x128xf32>
    %50 = arith.mulf %45, %49 : vector<8x128xf32>
    %cst_18 = arith.constant dense<0.000000e+00> : vector<8x512xf32>
    %51 = tpu.matmul %50, %9, %cst_18 {dimension_numbers = #tpu.dot_dimension_numbers<[1], [0], [0], [1], [0, 0, 1, 1], [], []>} : vector<8x128xf32>, vector<128x512xf32>, vector<8x512xf32> -> vector<8x512xf32>
    %52 = vector.extract_strided_slice %17 {offsets = [8, 0], sizes = [8, 512], strides = [1, 1]} : vector<64x512xf32> to vector<8x512xf32>
    %53 = arith.addf %51, %52 : vector<8x512xf32>
    %54 = vector.extract_strided_slice %18 {offsets = [48, 0], sizes = [8, 512], strides = [1, 1]} : vector<64x512xf32> to vector<8x512xf32>
    %55 = arith.addf %53, %54 : vector<8x512xf32>
    %56 = vector.extract_strided_slice %55 {offsets = [0, 0], sizes = [8, 128], strides = [1, 1]} : vector<8x512xf32> to vector<8x128xf32>
    %57 = arith.negf %56 : vector<8x128xf32>
    %58 = math.exp %57 : vector<8x128xf32>
    %cst_19 = arith.constant 1.000000e+00 : f32
    %59 = vector.broadcast %cst_19 : f32 to vector<8x128xf32>
    %60 = arith.addf %59, %58 : vector<8x128xf32>
    %61 = arith.divf %59, %60 : vector<8x128xf32>
    %62 = vector.extract_strided_slice %55 {offsets = [0, 128], sizes = [8, 128], strides = [1, 1]} : vector<8x512xf32> to vector<8x128xf32>
    %63 = arith.negf %62 : vector<8x128xf32>
    %64 = math.exp %63 : vector<8x128xf32>
    %cst_20 = arith.constant 1.000000e+00 : f32
    %65 = vector.broadcast %cst_20 : f32 to vector<8x128xf32>
    %66 = arith.addf %65, %64 : vector<8x128xf32>
    %67 = arith.divf %65, %66 : vector<8x128xf32>
    %68 = vector.extract_strided_slice %55 {offsets = [0, 256], sizes = [8, 128], strides = [1, 1]} : vector<8x512xf32> to vector<8x128xf32>
    %69 = math.tanh %68 : vector<8x128xf32>
    %70 = vector.extract_strided_slice %55 {offsets = [0, 384], sizes = [8, 128], strides = [1, 1]} : vector<8x512xf32> to vector<8x128xf32>
    %71 = arith.negf %70 : vector<8x128xf32>
    %72 = math.exp %71 : vector<8x128xf32>
    %cst_21 = arith.constant 1.000000e+00 : f32
    %73 = vector.broadcast %cst_21 : f32 to vector<8x128xf32>
    %74 = arith.addf %73, %72 : vector<8x128xf32>
    %75 = arith.divf %73, %74 : vector<8x128xf32>
    %76 = arith.mulf %67, %48 : vector<8x128xf32>
    %77 = arith.mulf %61, %69 : vector<8x128xf32>
    %78 = arith.addf %76, %77 : vector<8x128xf32>
    %79 = math.tanh %78 : vector<8x128xf32>
    %80 = arith.mulf %75, %79 : vector<8x128xf32>
    %cst_22 = arith.constant dense<0.000000e+00> : vector<8x512xf32>
    %81 = tpu.matmul %80, %9, %cst_22 {dimension_numbers = #tpu.dot_dimension_numbers<[1], [0], [0], [1], [0, 0, 1, 1], [], []>} : vector<8x128xf32>, vector<128x512xf32>, vector<8x512xf32> -> vector<8x512xf32>
    %82 = vector.extract_strided_slice %17 {offsets = [16, 0], sizes = [8, 512], strides = [1, 1]} : vector<64x512xf32> to vector<8x512xf32>
    %83 = arith.addf %81, %82 : vector<8x512xf32>
    %84 = vector.extract_strided_slice %18 {offsets = [40, 0], sizes = [8, 512], strides = [1, 1]} : vector<64x512xf32> to vector<8x512xf32>
    %85 = arith.addf %83, %84 : vector<8x512xf32>
    %86 = vector.extract_strided_slice %85 {offsets = [0, 0], sizes = [8, 128], strides = [1, 1]} : vector<8x512xf32> to vector<8x128xf32>
    %87 = arith.negf %86 : vector<8x128xf32>
    %88 = math.exp %87 : vector<8x128xf32>
    %cst_23 = arith.constant 1.000000e+00 : f32
    %89 = vector.broadcast %cst_23 : f32 to vector<8x128xf32>
    %90 = arith.addf %89, %88 : vector<8x128xf32>
    %91 = arith.divf %89, %90 : vector<8x128xf32>
    %92 = vector.extract_strided_slice %85 {offsets = [0, 128], sizes = [8, 128], strides = [1, 1]} : vector<8x512xf32> to vector<8x128xf32>
    %93 = arith.negf %92 : vector<8x128xf32>
    %94 = math.exp %93 : vector<8x128xf32>
    %cst_24 = arith.constant 1.000000e+00 : f32
    %95 = vector.broadcast %cst_24 : f32 to vector<8x128xf32>
    %96 = arith.addf %95, %94 : vector<8x128xf32>
    %97 = arith.divf %95, %96 : vector<8x128xf32>
    %98 = vector.extract_strided_slice %85 {offsets = [0, 256], sizes = [8, 128], strides = [1, 1]} : vector<8x512xf32> to vector<8x128xf32>
    %99 = math.tanh %98 : vector<8x128xf32>
    %100 = vector.extract_strided_slice %85 {offsets = [0, 384], sizes = [8, 128], strides = [1, 1]} : vector<8x512xf32> to vector<8x128xf32>
    %101 = arith.negf %100 : vector<8x128xf32>
    %102 = math.exp %101 : vector<8x128xf32>
    %cst_25 = arith.constant 1.000000e+00 : f32
    %103 = vector.broadcast %cst_25 : f32 to vector<8x128xf32>
    %104 = arith.addf %103, %102 : vector<8x128xf32>
    %105 = arith.divf %103, %104 : vector<8x128xf32>
    %106 = arith.mulf %97, %78 : vector<8x128xf32>
    %107 = arith.mulf %91, %99 : vector<8x128xf32>
    %108 = arith.addf %106, %107 : vector<8x128xf32>
    %109 = math.tanh %108 : vector<8x128xf32>
    %110 = arith.mulf %105, %109 : vector<8x128xf32>
    %cst_26 = arith.constant dense<0.000000e+00> : vector<8x512xf32>
    %111 = tpu.matmul %110, %9, %cst_26 {dimension_numbers = #tpu.dot_dimension_numbers<[1], [0], [0], [1], [0, 0, 1, 1], [], []>} : vector<8x128xf32>, vector<128x512xf32>, vector<8x512xf32> -> vector<8x512xf32>
    %112 = vector.extract_strided_slice %17 {offsets = [24, 0], sizes = [8, 512], strides = [1, 1]} : vector<64x512xf32> to vector<8x512xf32>
    %113 = arith.addf %111, %112 : vector<8x512xf32>
    %114 = vector.extract_strided_slice %18 {offsets = [32, 0], sizes = [8, 512], strides = [1, 1]} : vector<64x512xf32> to vector<8x512xf32>
    %115 = arith.addf %113, %114 : vector<8x512xf32>
    %116 = vector.extract_strided_slice %115 {offsets = [0, 0], sizes = [8, 128], strides = [1, 1]} : vector<8x512xf32> to vector<8x128xf32>
    %117 = arith.negf %116 : vector<8x128xf32>
    %118 = math.exp %117 : vector<8x128xf32>
    %cst_27 = arith.constant 1.000000e+00 : f32
    %119 = vector.broadcast %cst_27 : f32 to vector<8x128xf32>
    %120 = arith.addf %119, %118 : vector<8x128xf32>
    %121 = arith.divf %119, %120 : vector<8x128xf32>
    %122 = vector.extract_strided_slice %115 {offsets = [0, 128], sizes = [8, 128], strides = [1, 1]} : vector<8x512xf32> to vector<8x128xf32>
    %123 = arith.negf %122 : vector<8x128xf32>
    %124 = math.exp %123 : vector<8x128xf32>
    %cst_28 = arith.constant 1.000000e+00 : f32
    %125 = vector.broadcast %cst_28 : f32 to vector<8x128xf32>
    %126 = arith.addf %125, %124 : vector<8x128xf32>
    %127 = arith.divf %125, %126 : vector<8x128xf32>
    %128 = vector.extract_strided_slice %115 {offsets = [0, 256], sizes = [8, 128], strides = [1, 1]} : vector<8x512xf32> to vector<8x128xf32>
    %129 = math.tanh %128 : vector<8x128xf32>
    %130 = vector.extract_strided_slice %115 {offsets = [0, 384], sizes = [8, 128], strides = [1, 1]} : vector<8x512xf32> to vector<8x128xf32>
    %131 = arith.negf %130 : vector<8x128xf32>
    %132 = math.exp %131 : vector<8x128xf32>
    %cst_29 = arith.constant 1.000000e+00 : f32
    %133 = vector.broadcast %cst_29 : f32 to vector<8x128xf32>
    %134 = arith.addf %133, %132 : vector<8x128xf32>
    %135 = arith.divf %133, %134 : vector<8x128xf32>
    %136 = arith.mulf %127, %108 : vector<8x128xf32>
    %137 = arith.mulf %121, %129 : vector<8x128xf32>
    %138 = arith.addf %136, %137 : vector<8x128xf32>
    %139 = math.tanh %138 : vector<8x128xf32>
    %140 = arith.mulf %135, %139 : vector<8x128xf32>
    %cst_30 = arith.constant dense<0.000000e+00> : vector<8x512xf32>
    %141 = tpu.matmul %140, %9, %cst_30 {dimension_numbers = #tpu.dot_dimension_numbers<[1], [0], [0], [1], [0, 0, 1, 1], [], []>} : vector<8x128xf32>, vector<128x512xf32>, vector<8x512xf32> -> vector<8x512xf32>
    %142 = vector.extract_strided_slice %17 {offsets = [32, 0], sizes = [8, 512], strides = [1, 1]} : vector<64x512xf32> to vector<8x512xf32>
    %143 = arith.addf %141, %142 : vector<8x512xf32>
    %144 = vector.extract_strided_slice %18 {offsets = [24, 0], sizes = [8, 512], strides = [1, 1]} : vector<64x512xf32> to vector<8x512xf32>
    %145 = arith.addf %143, %144 : vector<8x512xf32>
    %146 = vector.extract_strided_slice %145 {offsets = [0, 0], sizes = [8, 128], strides = [1, 1]} : vector<8x512xf32> to vector<8x128xf32>
    %147 = arith.negf %146 : vector<8x128xf32>
    %148 = math.exp %147 : vector<8x128xf32>
    %cst_31 = arith.constant 1.000000e+00 : f32
    %149 = vector.broadcast %cst_31 : f32 to vector<8x128xf32>
    %150 = arith.addf %149, %148 : vector<8x128xf32>
    %151 = arith.divf %149, %150 : vector<8x128xf32>
    %152 = vector.extract_strided_slice %145 {offsets = [0, 128], sizes = [8, 128], strides = [1, 1]} : vector<8x512xf32> to vector<8x128xf32>
    %153 = arith.negf %152 : vector<8x128xf32>
    %154 = math.exp %153 : vector<8x128xf32>
    %cst_32 = arith.constant 1.000000e+00 : f32
    %155 = vector.broadcast %cst_32 : f32 to vector<8x128xf32>
    %156 = arith.addf %155, %154 : vector<8x128xf32>
    %157 = arith.divf %155, %156 : vector<8x128xf32>
    %158 = vector.extract_strided_slice %145 {offsets = [0, 256], sizes = [8, 128], strides = [1, 1]} : vector<8x512xf32> to vector<8x128xf32>
    %159 = math.tanh %158 : vector<8x128xf32>
    %160 = vector.extract_strided_slice %145 {offsets = [0, 384], sizes = [8, 128], strides = [1, 1]} : vector<8x512xf32> to vector<8x128xf32>
    %161 = arith.negf %160 : vector<8x128xf32>
    %162 = math.exp %161 : vector<8x128xf32>
    %cst_33 = arith.constant 1.000000e+00 : f32
    %163 = vector.broadcast %cst_33 : f32 to vector<8x128xf32>
    %164 = arith.addf %163, %162 : vector<8x128xf32>
    %165 = arith.divf %163, %164 : vector<8x128xf32>
    %166 = arith.mulf %157, %138 : vector<8x128xf32>
    %167 = arith.mulf %151, %159 : vector<8x128xf32>
    %168 = arith.addf %166, %167 : vector<8x128xf32>
    %169 = math.tanh %168 : vector<8x128xf32>
    %170 = arith.mulf %165, %169 : vector<8x128xf32>
    %cst_34 = arith.constant dense<0.000000e+00> : vector<8x512xf32>
    %171 = tpu.matmul %170, %9, %cst_34 {dimension_numbers = #tpu.dot_dimension_numbers<[1], [0], [0], [1], [0, 0, 1, 1], [], []>} : vector<8x128xf32>, vector<128x512xf32>, vector<8x512xf32> -> vector<8x512xf32>
    %172 = vector.extract_strided_slice %17 {offsets = [40, 0], sizes = [8, 512], strides = [1, 1]} : vector<64x512xf32> to vector<8x512xf32>
    %173 = arith.addf %171, %172 : vector<8x512xf32>
    %174 = vector.extract_strided_slice %18 {offsets = [16, 0], sizes = [8, 512], strides = [1, 1]} : vector<64x512xf32> to vector<8x512xf32>
    %175 = arith.addf %173, %174 : vector<8x512xf32>
    %176 = vector.extract_strided_slice %175 {offsets = [0, 0], sizes = [8, 128], strides = [1, 1]} : vector<8x512xf32> to vector<8x128xf32>
    %177 = arith.negf %176 : vector<8x128xf32>
    %178 = math.exp %177 : vector<8x128xf32>
    %cst_35 = arith.constant 1.000000e+00 : f32
    %179 = vector.broadcast %cst_35 : f32 to vector<8x128xf32>
    %180 = arith.addf %179, %178 : vector<8x128xf32>
    %181 = arith.divf %179, %180 : vector<8x128xf32>
    %182 = vector.extract_strided_slice %175 {offsets = [0, 128], sizes = [8, 128], strides = [1, 1]} : vector<8x512xf32> to vector<8x128xf32>
    %183 = arith.negf %182 : vector<8x128xf32>
    %184 = math.exp %183 : vector<8x128xf32>
    %cst_36 = arith.constant 1.000000e+00 : f32
    %185 = vector.broadcast %cst_36 : f32 to vector<8x128xf32>
    %186 = arith.addf %185, %184 : vector<8x128xf32>
    %187 = arith.divf %185, %186 : vector<8x128xf32>
    %188 = vector.extract_strided_slice %175 {offsets = [0, 256], sizes = [8, 128], strides = [1, 1]} : vector<8x512xf32> to vector<8x128xf32>
    %189 = math.tanh %188 : vector<8x128xf32>
    %190 = vector.extract_strided_slice %175 {offsets = [0, 384], sizes = [8, 128], strides = [1, 1]} : vector<8x512xf32> to vector<8x128xf32>
    %191 = arith.negf %190 : vector<8x128xf32>
    %192 = math.exp %191 : vector<8x128xf32>
    %cst_37 = arith.constant 1.000000e+00 : f32
    %193 = vector.broadcast %cst_37 : f32 to vector<8x128xf32>
    %194 = arith.addf %193, %192 : vector<8x128xf32>
    %195 = arith.divf %193, %194 : vector<8x128xf32>
    %196 = arith.mulf %187, %168 : vector<8x128xf32>
    %197 = arith.mulf %181, %189 : vector<8x128xf32>
    %198 = arith.addf %196, %197 : vector<8x128xf32>
    %199 = math.tanh %198 : vector<8x128xf32>
    %200 = arith.mulf %195, %199 : vector<8x128xf32>
    %cst_38 = arith.constant dense<0.000000e+00> : vector<8x512xf32>
    %201 = tpu.matmul %200, %9, %cst_38 {dimension_numbers = #tpu.dot_dimension_numbers<[1], [0], [0], [1], [0, 0, 1, 1], [], []>} : vector<8x128xf32>, vector<128x512xf32>, vector<8x512xf32> -> vector<8x512xf32>
    %202 = vector.extract_strided_slice %17 {offsets = [48, 0], sizes = [8, 512], strides = [1, 1]} : vector<64x512xf32> to vector<8x512xf32>
    %203 = arith.addf %201, %202 : vector<8x512xf32>
    %204 = vector.extract_strided_slice %18 {offsets = [8, 0], sizes = [8, 512], strides = [1, 1]} : vector<64x512xf32> to vector<8x512xf32>
    %205 = arith.addf %203, %204 : vector<8x512xf32>
    %206 = vector.extract_strided_slice %205 {offsets = [0, 0], sizes = [8, 128], strides = [1, 1]} : vector<8x512xf32> to vector<8x128xf32>
    %207 = arith.negf %206 : vector<8x128xf32>
    %208 = math.exp %207 : vector<8x128xf32>
    %cst_39 = arith.constant 1.000000e+00 : f32
    %209 = vector.broadcast %cst_39 : f32 to vector<8x128xf32>
    %210 = arith.addf %209, %208 : vector<8x128xf32>
    %211 = arith.divf %209, %210 : vector<8x128xf32>
    %212 = vector.extract_strided_slice %205 {offsets = [0, 128], sizes = [8, 128], strides = [1, 1]} : vector<8x512xf32> to vector<8x128xf32>
    %213 = arith.negf %212 : vector<8x128xf32>
    %214 = math.exp %213 : vector<8x128xf32>
    %cst_40 = arith.constant 1.000000e+00 : f32
    %215 = vector.broadcast %cst_40 : f32 to vector<8x128xf32>
    %216 = arith.addf %215, %214 : vector<8x128xf32>
    %217 = arith.divf %215, %216 : vector<8x128xf32>
    %218 = vector.extract_strided_slice %205 {offsets = [0, 256], sizes = [8, 128], strides = [1, 1]} : vector<8x512xf32> to vector<8x128xf32>
    %219 = math.tanh %218 : vector<8x128xf32>
    %220 = vector.extract_strided_slice %205 {offsets = [0, 384], sizes = [8, 128], strides = [1, 1]} : vector<8x512xf32> to vector<8x128xf32>
    %221 = arith.negf %220 : vector<8x128xf32>
    %222 = math.exp %221 : vector<8x128xf32>
    %cst_41 = arith.constant 1.000000e+00 : f32
    %223 = vector.broadcast %cst_41 : f32 to vector<8x128xf32>
    %224 = arith.addf %223, %222 : vector<8x128xf32>
    %225 = arith.divf %223, %224 : vector<8x128xf32>
    %226 = arith.mulf %217, %198 : vector<8x128xf32>
    %227 = arith.mulf %211, %219 : vector<8x128xf32>
    %228 = arith.addf %226, %227 : vector<8x128xf32>
    %229 = math.tanh %228 : vector<8x128xf32>
    %230 = arith.mulf %225, %229 : vector<8x128xf32>
    %cst_42 = arith.constant dense<0.000000e+00> : vector<8x512xf32>
    %231 = tpu.matmul %230, %9, %cst_42 {dimension_numbers = #tpu.dot_dimension_numbers<[1], [0], [0], [1], [0, 0, 1, 1], [], []>} : vector<8x128xf32>, vector<128x512xf32>, vector<8x512xf32> -> vector<8x512xf32>
    %232 = vector.extract_strided_slice %17 {offsets = [56, 0], sizes = [8, 512], strides = [1, 1]} : vector<64x512xf32> to vector<8x512xf32>
    %233 = arith.addf %231, %232 : vector<8x512xf32>
    %234 = vector.extract_strided_slice %18 {offsets = [0, 0], sizes = [8, 512], strides = [1, 1]} : vector<64x512xf32> to vector<8x512xf32>
    %235 = arith.addf %233, %234 : vector<8x512xf32>
    %236 = vector.extract_strided_slice %235 {offsets = [0, 0], sizes = [8, 128], strides = [1, 1]} : vector<8x512xf32> to vector<8x128xf32>
    %237 = arith.negf %236 : vector<8x128xf32>
    %238 = math.exp %237 : vector<8x128xf32>
    %cst_43 = arith.constant 1.000000e+00 : f32
    %239 = vector.broadcast %cst_43 : f32 to vector<8x128xf32>
    %240 = arith.addf %239, %238 : vector<8x128xf32>
    %241 = arith.divf %239, %240 : vector<8x128xf32>
    %242 = vector.extract_strided_slice %235 {offsets = [0, 128], sizes = [8, 128], strides = [1, 1]} : vector<8x512xf32> to vector<8x128xf32>
    %243 = arith.negf %242 : vector<8x128xf32>
    %244 = math.exp %243 : vector<8x128xf32>
    %cst_44 = arith.constant 1.000000e+00 : f32
    %245 = vector.broadcast %cst_44 : f32 to vector<8x128xf32>
    %246 = arith.addf %245, %244 : vector<8x128xf32>
    %247 = arith.divf %245, %246 : vector<8x128xf32>
    %248 = vector.extract_strided_slice %235 {offsets = [0, 256], sizes = [8, 128], strides = [1, 1]} : vector<8x512xf32> to vector<8x128xf32>
    %249 = math.tanh %248 : vector<8x128xf32>
    %250 = vector.extract_strided_slice %235 {offsets = [0, 384], sizes = [8, 128], strides = [1, 1]} : vector<8x512xf32> to vector<8x128xf32>
    %251 = arith.negf %250 : vector<8x128xf32>
    %252 = math.exp %251 : vector<8x128xf32>
    %cst_45 = arith.constant 1.000000e+00 : f32
    %253 = vector.broadcast %cst_45 : f32 to vector<8x128xf32>
    %254 = arith.addf %253, %252 : vector<8x128xf32>
    %255 = arith.divf %253, %254 : vector<8x128xf32>
    %256 = arith.mulf %247, %228 : vector<8x128xf32>
    %257 = arith.mulf %241, %249 : vector<8x128xf32>
    %258 = arith.addf %256, %257 : vector<8x128xf32>
    %259 = math.tanh %258 : vector<8x128xf32>
    %260 = arith.mulf %255, %259 : vector<8x128xf32>
    %261 = vector.broadcast %13 : vector<1x128xf32> to vector<8x128xf32>
    %262 = arith.mulf %260, %261 : vector<8x128xf32>
    %cst_46 = arith.constant dense<0.000000e+00> : vector<8xf32>
    %263 = vector.multi_reduction <add>, %262, %cst_46 [1] : vector<8x128xf32> to vector<8xf32>
    %264 = vector.shape_cast %263 : vector<8xf32> to vector<8x1xf32>
    %265 = vector.broadcast %14 : vector<1x1xf32> to vector<8x1xf32>
    %266 = arith.addf %264, %265 : vector<8x1xf32>
    %c0_47 = arith.constant 0 : index
    %c0_48 = arith.constant 0 : index
    %267 = vector.load %arg3[%c0_47, %c0_48] : memref<8x1xf32, #tpu.memory_space<vmem>>, vector<8x1xf32>
    tpu.vector_store %arg3[%c0_47, %c0_48], %266 {strides = array<i32>} : memref<8x1xf32, #tpu.memory_space<vmem>>, vector<8x1xf32>,
    return
  }
}

</mosaic_0001>

<bundles_post_ra>
// kernel: tpu_custom_call.1
= control target key start
LH: loop header
LB: loop body
LE: loop exit
PB: predicated region body
PF: predicated region fallthrough
CT: control target
= control target key end

     0   :  { %8 = vsyncpa [#allocation3], 0  ;;  %s2928_s12 = smov [#allocation2]   ;;  %s3562_s0 = inlined_call_operand.vmem [shape: f32[64,32], index: 0, kind: input, shape index: {}]   ;;  %s3563_s1 = inlined_call_operand.hbm [shape: f32[192,512], index: 1, kind: input, shape index: {}]   ;;  %s3564_s2 = inlined_call_operand.vmem [shape: f32[8,512], index: 2, kind: input, shape index: {}]   ;;  %s3565_s3 = inlined_call_operand.vmem [shape: f32[8,1], index: 3, kind: output, shape index: {}]  }
   0x1   :  { %s16_s13 = sshll.u32 %s2928_s12, 4  ;;  %s2904_s16 = scalar_lea.hbm %s3563_s1, 12288  ;;  %s17_s13 = int_to_ptr.vmem [resolvable:$true] %s16_s13 }
   0x2   :  { %p2905_p0 = scmp.ne.s32.totalorder %s3563_s1, %s2904_s16  ;;  %p2908_p1 = scmp.lt.u32.totalorder %s2904_s16, %s3563_s1 }
   0x4   :  { %p2910_p2 = pnand %p2908_p1, %p2905_p0 }
   0x6   :  { %2913 = shalt.err (!%p2910_p2)
}
   0x7   :  { %s2914_s21 = scalar_lea.vmem %s17_s13, 12288  ;;  %p2919_p4 = scmp.lt.s32.totalorder %s17_s13, %s17_s13 }
   0x8   :  { %p2915_p3 = scmp.ne.s32.totalorder %s17_s13, %s2914_s21  ;;  %p2920_p5 = scmp.lt.s32.totalorder %s2914_s21, %s2914_s21 }
   0xa   :  { %p2921_p6 = por %p2920_p5, %p2919_p4 }
   0xc   :  { %p2922_p7 = pnand %p2921_p6, %p2915_p3 }
   0xe   :  { %2925 = shalt.err (!%p2922_p7)
}
   0xf   :  { %s2929_s22 = smov 512   ;;  %s2930_s23 = smov 32  }
  0x10   :  { %22 = dma.hbm_to_vmem [thread:$0]  %s3563_s1, 12288, %s17_s13, [#allocation3], %s2929_s22, %s2929_s22, %s2930_s23  }
  0x11   :  { %2926 = dma.done.wait [#allocation3], 12288  }
  0x12   :  { %2927 = vsyncadd [#allocation3], 4294955008  ;;  %v2967_v0 = vld [vmem:[%s3562_s0] sm:$0xff]  ;;  %vm44_vm0 = vcmask 261120   ;;  %v2972_v1 = vld [vmem:[%s3562_s0 + $0x8] sm:$0xff]  ;;  %v2931_v47 = vmov 0.0  }
  0x13   :  { %v2977_v2 = vld [vmem:[%s3562_s0 + $0x10] sm:$0xff]  ;;  %v36_v3 = vmul.f32 %v2967_v0, %v2967_v0  ;;  %v37_v4 = vmul.f32 %v2972_v1, %v2972_v1  ;;  %v2988_v6 = vld [vmem:[%s3562_s0 + $0x18] sm:$0xff]  ;;  %v2995_v8 = vld [vmem:[%s3562_s0 + $0x20] sm:$0xff]  ;;  %301 = vmatprep.mubr.f32.mxu0 %v2931_v47  ;;  %414 = vmatprep.mubr.f32.mxu1 %v2931_v47  ;;  %vm2053_vm1 = vcmask 7168  }
  0x14   :  { %v38_v5 = vmul.f32 %v2977_v2, %v2977_v2  ;;  %v39_v7 = vmul.f32 %v2988_v6, %v2988_v6  ;;  %v3000_v9 = vld [vmem:[%s3562_s0 + $0x28] sm:$0xff]  ;;  %v40_v14 = vmul.f32 %v2995_v8, %v2995_v8  ;;  %v3013_v16 = vld [vmem:[%s3562_s0 + $0x30] sm:$0xff]  ;;  %v3018_v17 = vld [vmem:[%s3562_s0 + $0x38] sm:$0xff] }
  0x15   :  { %v45_v10 = vsel %vm44_vm0, %v36_v3, 0.0  ;;  %v48_v12 = vsel %vm44_vm0, %v37_v4, 0.0  ;;  %v41_v15 = vmul.f32 %v3000_v9, %v3000_v9  ;;  %v42_v20 = vmul.f32 %v3013_v16, %v3013_v16  ;;  %v158_v24 = vld [vmem:[#allocation2 + $0x208] sm:$0xff]  ;;  %v160_v26 = vld [vmem:[#allocation2 + $0x218] sm:$0xff]  ;;  %v157_v28 = vld [vmem:[#allocation2 + $0x200] sm:$0xff] }
  0x16   :  { %v51_v11 = vsel %vm44_vm0, %v38_v5, 0.0  ;;  %46 = vadd.xlane.f32.xlu0 %v45_v10  ;;  %v54_v13 = vsel %vm44_vm0, %v39_v7, 0.0  ;;  %v57_v18 = vsel %vm44_vm0, %v40_v14, 0.0  ;;  %v43_v21 = vmul.f32 %v3018_v17, %v3018_v17  ;;  %v162_v25 = vld [vmem:[#allocation2 + $0x228] sm:$0xff]  ;;  %v161_v29 = vld [vmem:[#allocation2 + $0x220] sm:$0xff]  ;;  %v164_v30 = vld [vmem:[#allocation2 + $0x238] sm:$0xff] }
  0x17   :  { %52 = vadd.xlane.f32.xlu1 %v51_v11  ;;  %v60_v19 = vsel %vm44_vm0, %v41_v15, 0.0  ;;  %v63_v22 = vsel %vm44_vm0, %v42_v20, 0.0  ;;  %v2116_v27 = vpack.c.bf16 %v162_v25, %v158_v24  ;;  %v2118_v31 = vpack.c.bf16 %v161_v29, %v157_v28  ;;  %v159_v33 = vld [vmem:[#allocation2 + $0x210] sm:$0xff]  ;;  %v166_v35 = vld [vmem:[#allocation2 + $0x248] sm:$0xff]  ;;  %v165_v38 = vld [vmem:[#allocation2 + $0x240] sm:$0xff] }
  0x18   :  { %v66_v23 = vsel %vm44_vm0, %v43_v21, 0.0  ;;  %v2124_v32 = vpack.c.bf16 %v164_v30, %v160_v26  ;;  %v163_v34 = vld [vmem:[#allocation2 + $0x230] sm:$0xff]  ;;  %v170_v37 = vld [vmem:[#allocation2 + $0x268] sm:$0xff]  ;;  %v169_v39 = vld [vmem:[#allocation2 + $0x260] sm:$0xff] }
  0x19   :  { %2117 = vmatprep.subr.bf16.mxu0 %v2116_v27  ;;  %v2126_v36 = vpack.c.bf16 %v163_v34, %v159_v33  ;;  %v2120_v40 = vpack.c.bf16 %v170_v37, %v166_v35  ;;  %v2122_v41 = vpack.c.bf16 %v169_v39, %v165_v38  ;;  %v168_v42 = vld [vmem:[#allocation2 + $0x258] sm:$0xff]  ;;  %v167_v44 = vld [vmem:[#allocation2 + $0x250] sm:$0xff]  ;;  %v174_v48 = vld [vmem:[#allocation2 + $0x288] sm:$0xff] }
  0x1a   :  { %49 = vadd.xlane.f32.xlu0 %v48_v12  ;;  %2119 = vmatpush1.bf16.msra.mxu0 %v2118_v31  ;;  %v172_v43 = vld [vmem:[#allocation2 + $0x278] sm:$0xff]  ;;  %v171_v46 = vld [vmem:[#allocation2 + $0x270] sm:$0xff]  ;;  %v178_v49 = vld [vmem:[#allocation2 + $0x2a8] sm:$0xff] }
  0x1b   :  { %55 = vadd.xlane.f32.xlu1 %v54_v13  ;;  %2125 = vmatprep.subr.bf16.mxu1 %v2124_v32  ;;  %v2128_v45 = vpack.c.bf16 %v172_v43, %v168_v42  ;;  %v2130_v50 = vpack.c.bf16 %v171_v46, %v167_v44  ;;  %v2132_v51 = vpack.c.bf16 %v178_v49, %v174_v48  ;;  %v176_v52 = vld [vmem:[#allocation2 + $0x298] sm:$0xff]  ;;  %v173_v3 = vld [vmem:[#allocation2 + $0x280] sm:$0xff]  ;;  %v175_v7 = vld [vmem:[#allocation2 + $0x290] sm:$0xff] }
  0x1c   :  { %2127 = vmatpush1.bf16.msra.mxu1 %v2126_v36  ;;  %2121 = vmatprep.subr.bf16.mxu0 %v2120_v40  ;;  %v180_v53 = vld [vmem:[#allocation2 + $0x2b8] sm:$0xff]  ;;  %v177_v4 = vld [vmem:[#allocation2 + $0x2a0] sm:$0xff]  ;;  %v179_v10 = vld [vmem:[#allocation2 + $0x2b0] sm:$0xff] }
  0x1d   :  { %2129 = vmatprep.subr.bf16.mxu1 %v2128_v45  ;;  %v2140_v54 = vpack.c.bf16 %v180_v53, %v176_v52  ;;  %v182_v11 = vld [vmem:[#allocation2 + $0x2c8] sm:$0xff]  ;;  %v184_v14 = vld [vmem:[#allocation2 + $0x2d8] sm:$0xff]  ;;  %v2142_v21 = vpack.c.bf16 %v179_v10, %v175_v7  ;;  %v183_v27 = vld [vmem:[#allocation2 + $0x2d0] sm:$0xff] }
  0x1e   :  { %58 = vadd.xlane.f32.xlu0 %v57_v18  ;;  %2123 = vmatpush1.bf16.msra.mxu0 %v2122_v41  ;;  %v186_v13 = vld [vmem:[#allocation2 + $0x2e8] sm:$0xff]  ;;  %v188_v15 = vld [vmem:[#allocation2 + $0x2f8] sm:$0xff]  ;;  %v187_v28 = vld [vmem:[#allocation2 + $0x2f0] sm:$0xff] }
  0x1f   :  { %61 = vadd.xlane.f32.xlu1 %v60_v19  ;;  %2133 = vmatprep.subr.bf16.mxu0 %v2132_v51  ;;  %v2134_v19 = vpack.c.bf16 %v177_v4, %v173_v3  ;;  %v2136_v25 = vpack.c.bf16 %v186_v13, %v182_v11  ;;  %v2144_v26 = vpack.c.bf16 %v188_v15, %v184_v14  ;;  %v94_v29 = vld [vmem:[#allocation2 + $0x8] sm:$0xff]  ;;  %v96_v32 = vld [vmem:[#allocation2 + $0x18] sm:$0xff]  ;;  %v99_v53 = vld [vmem:[#allocation2 + $0x30] sm:$0xff] }
  0x20   :  { %2131 = vmatpush1.bf16.msra.mxu1 %v2130_v50  ;;  %v100_v33 = vld [vmem:[#allocation2 + $0x38] sm:$0xff]  ;;  %v2146_v37 = vpack.c.bf16 %v187_v28, %v183_v27  ;;  %v97_v50 = vld [vmem:[#allocation2 + $0x20] sm:$0xff]  ;;  %v102_v51 = vld [vmem:[#allocation2 + $0x48] sm:$0xff] }
  0x21   :  { %2141 = vmatprep.subr.bf16.mxu1 %v2140_v54  ;;  %v3044_v40 = vpack.c.bf16 %v100_v33, %v96_v32  ;;  %v106_v52 = vld [vmem:[#allocation2 + $0x68] sm:$0xff]  ;;  %v103_v3 = vld [vmem:[#allocation2 + $0x50] sm:$0xff]  ;;  %v113_v7 = vld [vmem:[#allocation2 + $0xa0] sm:$0xff] }
  0x22   :  { %64 = vadd.xlane.f32.xlu0 %v63_v22  ;;  %v181_v22 = vld [vmem:[#allocation2 + $0x2c0] sm:$0xff]  ;;  %v107_v10 = vld [vmem:[#allocation2 + $0x70] sm:$0xff]  ;;  %v116_v13 = vld [vmem:[#allocation2 + $0xb8] sm:$0xff] }
  0x23   :  { %67 = vadd.xlane.f32.xlu1 %v66_v23  ;;  %v185_v23 = vld [vmem:[#allocation2 + $0x2e0] sm:$0xff]  ;;  %v118_v14 = vld [vmem:[#allocation2 + $0xc8] sm:$0xff]  ;;  %v124_v27 = vld [vmem:[#allocation2 + $0xf8] sm:$0xff] }
  0x24   :  { %v2138_v36 = vpack.c.bf16 %v185_v23, %v181_v22  ;;  %v122_v15 = vld [vmem:[#allocation2 + $0xe8] sm:$0xff]  ;;  %v117_v22 = vld [vmem:[#allocation2 + $0xc0] sm:$0xff]  ;;  %v123_v32 = vld [vmem:[#allocation2 + $0xf0] sm:$0xff] }
  0x25   :  { %v121_v23 = vld [vmem:[#allocation2 + $0xe0] sm:$0xff]  ;;  %v126_v28 = vld [vmem:[#allocation2 + $0x108] sm:$0xff] }
  0x26   :  { %v125_v33 = vld [vmem:[#allocation2 + $0x100] sm:$0xff] }
  0xa3   :  { %v47_v55 = vpop.xlane.xlu0 %46 }
  0xa4   :  { %v53_v56 = vpop.xlane.xlu1 %52  ;;  %v69_v57 = vmax.f32 %v47_v55, 1e-24  ;;  %v3110_v55 = vpack.c.bf16 %v106_v52, %v102_v51  ;;  %v140_v51 = vld [vmem:[#allocation2 + $0x178] sm:$0xff]  ;;  %v142_v52 = vld [vmem:[#allocation2 + $0x188] sm:$0xff] }
  0xa5   :  { %v71_v58 = vmax.f32 %v53_v56, 1e-24  ;;  %v101_v56 = vld [vmem:[#allocation2 + $0x40] sm:$0xff] }
  0xa6   :  { %2760 = vrsqrt.f32 %v69_v57  ;;  %v105_v57 = vld [vmem:[#allocation2 + $0x60] sm:$0xff] }
  0xa7   :  { %v50_v59 = vpop.xlane.xlu0 %49  ;;  %2762 = vrsqrt.f32 %v71_v58 }
  0xa8   :  { %v56_v60 = vpop.xlane.xlu1 %55  ;;  %v70_v61 = vmax.f32 %v50_v59, 1e-24  ;;  %v110_v59 = vld [vmem:[#allocation2 + $0x88] sm:$0xff] }
  0xa9   :  { %v72_v62 = vmax.f32 %v56_v60, 1e-24  ;;  %v114_v60 = vld [vmem:[#allocation2 + $0xa8] sm:$0xff] }
  0xaa   :  { %2764 = vrsqrt.f32 %v70_v61  ;;  %v104_v61 = vld [vmem:[#allocation2 + $0x58] sm:$0xff]  ;;  %v3124_v4 = vpack.c.bf16 %v114_v60, %v110_v59  ;;  %v139_v59 = vld [vmem:[#allocation2 + $0x170] sm:$0xff] }
  0xab   :  { %v59_v63 = vpop.xlane.xlu0 %58  ;;  %2766 = vrsqrt.f32 %v72_v62  ;;  %v108_v62 = vld [vmem:[#allocation2 + $0x78] sm:$0xff] }
  0xac   :  { %v73_v5 = vmax.f32 %v59_v63, 1e-24  ;;  %v62_v12 = vpop.xlane.xlu1 %61  ;;  %v3120_v63 = vpack.c.bf16 %v105_v57, %v101_v56  ;;  %v3127_v11 = vpack.c.bf16 %v108_v62, %v104_v61  ;;  %v135_v57 = vld [vmem:[#allocation2 + $0x150] sm:$0xff]  ;;  %v141_v61 = vld [vmem:[#allocation2 + $0x180] sm:$0xff] }
  0xad   :  { %v74_v24 = vmax.f32 %v62_v12, 1e-24  ;;  %v112_v12 = vld [vmem:[#allocation2 + $0x98] sm:$0xff]  ;;  %v145_v62 = vld [vmem:[#allocation2 + $0x1a0] sm:$0xff] }
  0xae   :  { %2768 = vrsqrt.f32 %v73_v5  ;;  %v109_v5 = vld [vmem:[#allocation2 + $0x80] sm:$0xff] }
  0xaf   :  { %v65_v31 = vpop.xlane.xlu0 %64  ;;  %2770 = vrsqrt.f32 %v74_v24  ;;  %v3142_v24 = vpack.c.bf16 %v116_v13, %v112_v12  ;;  %v3206_v12 = vpack.c.bf16 %v139_v59, %v135_v57  ;;  %v3210_v13 = vpack.c.bf16 %v145_v62, %v141_v61 }
  0xb0   :  { %v2761_v18 = vpop.eup %2760  ;;  %v75_v38 = vmax.f32 %v65_v31, 1e-24  ;;  %v68_v41 = vpop.xlane.xlu1 %67  ;;  %v3154_v31 = vpack.c.bf16 %v121_v23, %v117_v22  ;;  %v153_v22 = vld [vmem:[#allocation2 + $0x1e0] sm:$0xff]  ;;  %v152_v23 = vld [vmem:[#allocation2 + $0x1d8] sm:$0xff] }
  0xb1   :  { %v3031_v20 = vmul.f32 %v2761_v18, %v2967_v0  ;;  %v2763_v30 = vpop.eup %2762  ;;  %v98_v0 = vld [vmem:[#allocation2 + $0x28] sm:$0xff]  ;;  %v76_v43 = vmax.f32 %v68_v41, 1e-24  ;;  %v3135_v18 = vpack.c.bf16 %v113_v7, %v109_v5  ;;  %v148_v5 = vld [vmem:[#allocation2 + $0x1b8] sm:$0xff] }
  0xb2   :  { %v3042_v39 = vpack.c.bf16 %v98_v0, %v94_v29  ;;  %2772 = vrsqrt.f32 %v75_v38  ;;  %v130_v29 = vld [vmem:[#allocation2 + $0x128] sm:$0xff]  ;;  %v119_v0 = vld [vmem:[#allocation2 + $0xd0] sm:$0xff]  ;;  %v132_v38 = vld [vmem:[#allocation2 + $0x138] sm:$0xff] }
  0xb3   :  { %2060 = vmatmul.mubr.msk.f32.vlgmr.msra.gmra.mrb[0].mxu0 %vm44_vm0, %v3031_v20  ;;  %2068 = vmatmul.mubr.msk.f32.vlgmr.msra.gmra.mrb[0].mxu1 %vm44_vm0, %v3031_v20  ;;  %2774 = vrsqrt.f32 %v76_v43  ;;  %v138_v41 = vld [vmem:[#allocation2 + $0x168] sm:$0xff] }
  0xb4   :  { %v2765_v34 = vpop.eup %2764  ;;  %2135 = vmatpush1.bf16.msra.mxu0 %v2134_v19  ;;  %307 = vmatprep.mubr.f32.mxu0 %v2931_v47  ;;  %v3137_v19 = vpack.c.bf16 %v107_v10, %v103_v3  ;;  %v144_v3 = vld [vmem:[#allocation2 + $0x198] sm:$0xff]  ;;  %v150_v7 = vld [vmem:[#allocation2 + $0x1c8] sm:$0xff] }
  0xb5   :  { %420 = vmatprep.mubr.f32.mxu1 %v2931_v47  ;;  %v3040_v35 = vmul.f32 %v2765_v34, %v2972_v1  ;;  %2143 = vmatpush1.bf16.msra.mxu1 %v2142_v21  ;;  %v3051_v1 = vmul.f32 %v2763_v30, %v2977_v2  ;;  %v2767_v42 = vpop.eup %2766  ;;  %v115_v21 = vld [vmem:[#allocation2 + $0xb0] sm:$0xff]  ;;  %v129_v34 = vld [vmem:[#allocation2 + $0x120] sm:$0xff]  ;;  %v154_v10 = vld [vmem:[#allocation2 + $0x1e8] sm:$0xff] }
  0xb6   :  { %2137 = vmatprep.subr.bf16.mxu0 %v2136_v25  ;;  %2145 = vmatprep.subr.bf16.mxu1 %v2144_v26  ;;  %v3062_v2 = vmul.f32 %v2767_v42, %v2988_v6  ;;  %v3144_v25 = vpack.c.bf16 %v122_v15, %v118_v14  ;;  %v120_v26 = vld [vmem:[#allocation2 + $0xd8] sm:$0xff]  ;;  %v3170_v42 = vpack.c.bf16 %v123_v32, %v119_v0  ;;  %v143_v14 = vld [vmem:[#allocation2 + $0x190] sm:$0xff] }
  0xb7   :  { %2061 = vmatmul.mubr.msk.f32.gmra.mrb[2].mxu0 %vm44_vm0, %v3040_v35  ;;  %2069 = vmatmul.mubr.msk.f32.gmra.mrb[2].mxu1 %vm44_vm0, %v3040_v35  ;;  %v3172_v43 = vpack.c.bf16 %v129_v34, %v125_v33  ;;  %v147_v15 = vld [vmem:[#allocation2 + $0x1b0] sm:$0xff] }
  0xb8   :  { %313 = vmatprep.mubr.f32.mxu0 %v2931_v47  ;;  %426 = vmatprep.mubr.f32.mxu1 %v2931_v47  ;;  %v2769_v44 = vpop.eup %2768  ;;  %v151_v0 = vld [vmem:[#allocation2 + $0x1d0] sm:$0xff] }
  0xb9   :  { %2139 = vmatpush1.bf16.msra.mxu0 %v2138_v36  ;;  %2147 = vmatpush1.bf16.msra.mxu1 %v2146_v37  ;;  %v3071_v45 = vmul.f32 %v2769_v44, %v2995_v8  ;;  %v2771_v46 = vpop.eup %2770  ;;  %v3162_v36 = vpack.c.bf16 %v130_v29, %v126_v28  ;;  %v128_v37 = vld [vmem:[#allocation2 + $0x118] sm:$0xff]  ;;  %v127_v44 = vld [vmem:[#allocation2 + $0x110] sm:$0xff] }
  0xba   :  { %2149 = vmatprep.subr.bf16.mxu0 %v3042_v39  ;;  %2181 = vmatprep.subr.bf16.mxu1 %v3044_v40  ;;  %v3080_v6 = vmul.f32 %v2771_v46, %v3000_v9  ;;  %v131_v46 = vld [vmem:[#allocation2 + $0x130] sm:$0xff] }
  0xbb   :  { %2062 = vmatmul.mubr.msk.f32.gmra.mrb[4].mxu0 %vm44_vm0, %v3051_v1  ;;  %2070 = vmatmul.mubr.msk.f32.gmra.mrb[4].mxu1 %vm44_vm0, %v3051_v1  ;;  %v155_v32 = vld [vmem:[#allocation2 + $0x1f0] sm:$0xff] }
  0xbc   :  { %319 = vmatprep.mubr.f32.mxu0 %v2931_v47  ;;  %432 = vmatprep.mubr.f32.mxu1 %v2931_v47  ;;  %v2773_v48 = vpop.eup %2772 }
  0xbd   :  { %v3089_v8 = vmul.f32 %v2773_v48, %v3013_v16  ;;  %v2775_v49 = vpop.eup %2774  ;;  %v93_v16 = vld [vmem:[#allocation2] sm:$0xff] }
  0xbe   :  { %v3098_v9 = vmul.f32 %v2775_v49, %v3018_v17  ;;  %v95_v17 = vld [vmem:[#allocation2 + $0x10] sm:$0xff]  ;;  %v3108_v54 = vpack.c.bf16 %v97_v50, %v93_v16  ;;  %v133_v49 = vld [vmem:[#allocation2 + $0x140] sm:$0xff]  ;;  %v136_v50 = vld [vmem:[#allocation2 + $0x158] sm:$0xff] }
  0xbf   :  { %2063 = vmatmul.mubr.msk.f32.gmra.mrb[6].mxu0 %vm44_vm0, %v3062_v2  ;;  %2071 = vmatmul.mubr.msk.f32.gmra.mrb[6].mxu1 %vm44_vm0, %v3062_v2  ;;  %v3112_v58 = vpack.c.bf16 %v99_v53, %v95_v17  ;;  %v137_v16 = vld [vmem:[#allocation2 + $0x160] sm:$0xff]  ;;  %v146_v17 = vld [vmem:[#allocation2 + $0x1a8] sm:$0xff]  ;;  %v3188_v53 = vpack.c.bf16 %v131_v46, %v127_v44 }
  0xc0   :  { %325 = vmatprep.mubr.f32.mxu0 %v2931_v47  ;;  %438 = vmatprep.mubr.f32.mxu1 %v2931_v47  ;;  %v3192_v56 = vpack.c.bf16 %v137_v16, %v133_v49  ;;  %v3198_v60 = vpack.c.bf16 %v146_v17, %v142_v52 }
  0xc3   :  { %2064 = vmatmul.mubr.msk.f32.gmra.mrb[8].mxu0 %vm44_vm0, %v3071_v45  ;;  %2072 = vmatmul.mubr.msk.f32.gmra.mrb[8].mxu1 %vm44_vm0, %v3071_v45 }
  0xc4   :  { %331 = vmatprep.mubr.f32.mxu0 %v2931_v47  ;;  %444 = vmatprep.mubr.f32.mxu1 %v2931_v47 }
  0xc7   :  { %2065 = vmatmul.mubr.msk.f32.gmra.mrb[10].mxu0 %vm44_vm0, %v3080_v6  ;;  %2073 = vmatmul.mubr.msk.f32.gmra.mrb[10].mxu1 %vm44_vm0, %v3080_v6 }
  0xc8   :  { %337 = vmatprep.mubr.f32.mxu0 %v2931_v47  ;;  %450 = vmatprep.mubr.f32.mxu1 %v2931_v47 }
  0xcb   :  { %2066 = vmatmul.mubr.msk.f32.gmra.mrb[12].mxu0 %vm44_vm0, %v3089_v8  ;;  %2074 = vmatmul.mubr.msk.f32.gmra.mrb[12].mxu1 %vm44_vm0, %v3089_v8 }
  0xcc   :  { %343 = vmatprep.mubr.f32.mxu0 %v2931_v47  ;;  %456 = vmatprep.mubr.f32.mxu1 %v2931_v47 }
  0xcf   :  { %2067 = vmatmul.mubr.msk.f32.gmra.mrb[14].mxu0 %vm44_vm0, %v3098_v9  ;;  %2075 = vmatmul.mubr.msk.f32.gmra.mrb[14].mxu1 %vm44_vm0, %v3098_v9 }
  0xd0   :  { %527 = vmatprep.mubr.f32.mxu0 %v2931_v47  ;;  %640 = vmatprep.mubr.f32.mxu1 %v2931_v47 }
  0xd7   :  { %2076 = vmatmul.mubr.msk.f32.vlgmr.msra.gmra.mrb[14].mxu0 %vm44_vm0, %v3031_v20  ;;  %2084 = vmatmul.mubr.msk.f32.vlgmr.msra.gmra.mrb[14].mxu1 %vm44_vm0, %v3031_v20  ;;  %v111_v20 = vld [vmem:[#allocation2 + $0x90] sm:$0xff] }
  0xd8   :  { %2151 = vmatpush1.bf16.msra.mxu0 %v3108_v54  ;;  %533 = vmatprep.mubr.f32.mxu0 %v2931_v47  ;;  %v3152_v30 = vpack.c.bf16 %v115_v21, %v111_v20  ;;  %v149_v20 = vld [vmem:[#allocation2 + $0x1c0] sm:$0xff]  ;;  %v3216_v21 = vpack.c.bf16 %v154_v10, %v150_v7 }
  0xd9   :  { %646 = vmatprep.mubr.f32.mxu1 %v2931_v47  ;;  %2153 = vmatprep.subr.bf16.mxu0 %v3110_v55  ;;  %v3228_v28 = vpack.c.bf16 %v153_v22, %v149_v20 }
  0xda   :  { %2183 = vmatpush1.bf16.msra.mxu1 %v3112_v58 }
  0xdb   :  { %2077 = vmatmul.mubr.msk.f32.gmra.mrb[12].mxu0 %vm44_vm0, %v3040_v35  ;;  %2085 = vmatmul.mubr.msk.f32.gmra.mrb[12].mxu1 %vm44_vm0, %v3040_v35  ;;  %v3160_v35 = vpack.c.bf16 %v124_v27, %v120_v26  ;;  %v156_v26 = vld [vmem:[#allocation2 + $0x1f8] sm:$0xff]  ;;  %v3224_v27 = vpack.c.bf16 %v147_v15, %v143_v14 }
  0xdc   :  { %2155 = vmatpush1.bf16.msra.mxu0 %v3120_v63  ;;  %539 = vmatprep.mubr.f32.mxu0 %v2931_v47  ;;  %v3230_v29 = vpack.c.bf16 %v156_v26, %v152_v23 }
  0xdd   :  { %652 = vmatprep.mubr.f32.mxu1 %v2931_v47  ;;  %2157 = vmatprep.subr.bf16.mxu0 %v3124_v4 }
  0xde   :  { %2185 = vmatprep.subr.bf16.mxu1 %v3127_v11 }
  0xdf   :  { %2078 = vmatmul.mubr.msk.f32.gmra.mrb[10].mxu0 %vm44_vm0, %v3051_v1  ;;  %2086 = vmatmul.mubr.msk.f32.gmra.mrb[10].mxu1 %vm44_vm0, %v3051_v1  ;;  %v134_v1 = vld [vmem:[#allocation2 + $0x148] sm:$0xff] }
  0xe0   :  { %2159 = vmatpush1.bf16.msra.mxu0 %v3135_v18  ;;  %2187 = vmatpush1.bf16.msra.mxu1 %v3137_v19  ;;  %v3180_v48 = vpack.c.bf16 %v138_v41, %v134_v1 }
  0xe1   :  { %545 = vmatprep.mubr.f32.mxu0 %v2931_v47  ;;  %658 = vmatprep.mubr.f32.mxu1 %v2931_v47 }
  0xe2   :  { %2189 = vmatprep.subr.bf16.mxu1 %v3142_v24  ;;  %2161 = vmatprep.subr.bf16.mxu0 %v3144_v25 }
  0xe3   :  { %2079 = vmatmul.mubr.msk.f32.gmra.mrb[8].mxu0 %vm44_vm0, %v3062_v2  ;;  %2087 = vmatmul.mubr.msk.f32.gmra.mrb[8].mxu1 %vm44_vm0, %v3062_v2  ;;  %v3178_v2 = vpack.c.bf16 %v132_v38, %v128_v37  ;;  %v189_v37 = vld [vmem:[%s3564_s2] ss:$8 sm:$0xf] }
  0xe4   :  { %2191 = vmatpush1.bf16.msra.mxu1 %v3152_v30  ;;  %2163 = vmatpush1.bf16.msra.mxu0 %v3154_v31 }
  0xe5   :  { %551 = vmatprep.mubr.f32.mxu0 %v2931_v47  ;;  %664 = vmatprep.mubr.f32.mxu1 %v2931_v47 }
  0xe6   :  { %2193 = vmatprep.subr.bf16.mxu1 %v3160_v35  ;;  %2165 = vmatprep.subr.bf16.mxu0 %v3162_v36 }
  0xe7   :  { %2080 = vmatmul.mubr.msk.f32.gmra.mrb[6].mxu0 %vm44_vm0, %v3071_v45  ;;  %2088 = vmatmul.mubr.msk.f32.gmra.mrb[6].mxu1 %vm44_vm0, %v3071_v45  ;;  %v3196_v45 = vpack.c.bf16 %v140_v51, %v136_v50 }
  0xe8   :  { %2195 = vmatpush1.bf16.msra.mxu1 %v3170_v42  ;;  %2167 = vmatpush1.bf16.msra.mxu0 %v3172_v43 }
  0xe9   :  { %557 = vmatprep.mubr.f32.mxu0 %v2931_v47  ;;  %670 = vmatprep.mubr.f32.mxu1 %v2931_v47 }
  0xea   :  { %2197 = vmatprep.subr.bf16.mxu1 %v3178_v2  ;;  %2169 = vmatprep.subr.bf16.mxu0 %v3180_v48 }
  0xeb   :  { %2081 = vmatmul.mubr.msk.f32.gmra.mrb[4].mxu0 %vm44_vm0, %v3080_v6  ;;  %2089 = vmatmul.mubr.msk.f32.gmra.mrb[4].mxu1 %vm44_vm0, %v3080_v6  ;;  %v3214_v6 = vpack.c.bf16 %v148_v5, %v144_v3 }
  0xec   :  { %2199 = vmatpush1.bf16.msra.mxu1 %v3188_v53  ;;  %563 = vmatprep.mubr.f32.mxu0 %v2931_v47 }
  0xed   :  { %676 = vmatprep.mubr.f32.mxu1 %v2931_v47  ;;  %2171 = vmatpush1.bf16.msra.mxu0 %v3192_v56 }
  0xee   :  { %2201 = vmatprep.subr.bf16.mxu1 %v3196_v45  ;;  %2173 = vmatprep.subr.bf16.mxu0 %v3198_v60 }
  0xef   :  { %2082 = vmatmul.mubr.msk.f32.gmra.mrb[2].mxu0 %vm44_vm0, %v3089_v8  ;;  %2090 = vmatmul.mubr.msk.f32.gmra.mrb[2].mxu1 %vm44_vm0, %v3089_v8  ;;  %v3239_v8 = vpack.c.bf16 %v155_v32, %v151_v0 }
  0xf0   :  { %2203 = vmatpush1.bf16.msra.mxu1 %v3206_v12  ;;  %569 = vmatprep.mubr.f32.mxu0 %v2931_v47 }
  0xf1   :  { %682 = vmatprep.mubr.f32.mxu1 %v2931_v47  ;;  %2175 = vmatpush1.bf16.msra.mxu0 %v3210_v13 }
  0xf2   :  { %2205 = vmatprep.subr.bf16.mxu1 %v3214_v6  ;;  %2177 = vmatprep.subr.bf16.mxu0 %v3216_v21 }
  0xf3   :  { %2083 = vmatmul.mubr.msk.f32.gmra.mrb[0].mxu0 %vm44_vm0, %v3098_v9  ;;  %2091 = vmatmul.mubr.msk.f32.gmra.mrb[0].mxu1 %vm44_vm0, %v3098_v9  ;;  %v193_v9 = vlaneseq }
  0xf4   :  { %2207 = vmatpush1.bf16.msra.mxu1 %v3224_v27  ;;  %753 = vmatprep.mubr.f32.mxu0 %v2931_v47 }
  0xf5   :  { %2179 = vmatpush1.bf16.msra.mxu0 %v3228_v28  ;;  %2209 = vmatprep.subr.bf16.mxu1 %v3230_v29  ;;  %v194_v33 = vshrl.u32 %v193_v9, 7 }
  0xf6   :  { %824 = vmatprep.mubr.f32.mxu1 %v2931_v47  ;;  %2213 = vmatprep.subr.bf16.mxu0 %v3042_v39 }
  0xf7   :  { %v195_v34 = vsub.s32 0, %v194_v33  ;;  %v199_v38 = vsub.s32 1, %v194_v33  ;;  %v207_v49 = vsub.s32 3, %v194_v33  ;;  %v203_v61 = vsub.s32 2, %v194_v33 }
  0xf8   :  { %2211 = vmatpush1.bf16.msra.mxu1 %v3239_v8 }
  0xf9   :  { %2245 = vmatprep.subr.bf16.mxu1 %v3044_v40  ;;  %v3287_v1 = vrot.slane %v189_v37, %v195_v34  ;;  %v3289_v41 = vrot.slane %v189_v37, %v199_v38  ;;  %v3293_v59 = vrot.slane %v189_v37, %v207_v49  ;;  %v3296_v3 = vrot.slane %v189_v37, %v203_v61 }
  0xfb   :  { %754 = vmatmul.mubr.f32.vlgmr.msra.gmra.mrb[0].mxu0 %v2931_v47  ;;  %825 = vmatmul.mubr.f32.vlgmr.msra.gmra.mrb[0].mxu1 %v2931_v47 }
  0xfc   :  { %2215 = vmatpush1.bf16.msra.mxu0 %v3108_v54  ;;  %2247 = vmatpush1.bf16.msra.mxu1 %v3112_v58 }
  0xfd   :  { %2217 = vmatprep.subr.bf16.mxu0 %v3110_v55  ;;  %2249 = vmatprep.subr.bf16.mxu1 %v3127_v11 }
  0xfe   :  { %923 = vmatprep.mubr.f32.mxu0 %v2931_v47  ;;  %994 = vmatprep.mubr.f32.mxu1 %v2931_v47 }
 0x100   :  { %2219 = vmatpush1.bf16.msra.mxu0 %v3120_v63  ;;  %2251 = vmatpush1.bf16.msra.mxu1 %v3137_v19 }
 0x101   :  { %2221 = vmatprep.subr.bf16.mxu0 %v3124_v4  ;;  %2253 = vmatprep.subr.bf16.mxu1 %v3142_v24 }
 0x104   :  { %2223 = vmatpush1.bf16.msra.mxu0 %v3135_v18  ;;  %2255 = vmatpush1.bf16.msra.mxu1 %v3152_v30 }
 0x105   :  { %2225 = vmatprep.subr.bf16.mxu0 %v3144_v25  ;;  %2257 = vmatprep.subr.bf16.mxu1 %v3160_v35 }
 0x108   :  { %2227 = vmatpush1.bf16.msra.mxu0 %v3154_v31  ;;  %2259 = vmatpush1.bf16.msra.mxu1 %v3170_v42 }
 0x109   :  { %2229 = vmatprep.subr.bf16.mxu0 %v3162_v36  ;;  %2261 = vmatprep.subr.bf16.mxu1 %v3178_v2 }
 0x10c   :  { %2231 = vmatpush1.bf16.msra.mxu0 %v3172_v43  ;;  %2263 = vmatpush1.bf16.msra.mxu1 %v3188_v53 }
 0x10d   :  { %2233 = vmatprep.subr.bf16.mxu0 %v3180_v48  ;;  %2265 = vmatprep.subr.bf16.mxu1 %v3196_v45 }
 0x110   :  { %2235 = vmatpush1.bf16.msra.mxu0 %v3192_v56  ;;  %2267 = vmatpush1.bf16.msra.mxu1 %v3206_v12 }
 0x111   :  { %2237 = vmatprep.subr.bf16.mxu0 %v3198_v60  ;;  %2269 = vmatprep.subr.bf16.mxu1 %v3214_v6 }
 0x114   :  { %2239 = vmatpush1.bf16.msra.mxu0 %v3210_v13  ;;  %2271 = vmatpush1.bf16.msra.mxu1 %v3224_v27 }
 0x115   :  { %2241 = vmatprep.subr.bf16.mxu0 %v3216_v21  ;;  %2273 = vmatprep.subr.bf16.mxu1 %v3230_v29 }
 0x118   :  { %2243 = vmatpush1.bf16.msra.mxu0 %v3228_v28  ;;  %2275 = vmatpush1.bf16.msra.mxu1 %v3239_v8 }
 0x119   :  { %2277 = vmatprep.subr.bf16.mxu0 %v3042_v39  ;;  %2309 = vmatprep.subr.bf16.mxu1 %v3044_v40 }
 0x1ce   :  { %v755_v44 = vpop.f32.mrb[0].mxu0  ;;  %v826_v46 = vpop.f32.mrb[0].mxu1 }
 0x1cf   :  { %v2660_v16 = vadd.f32 %v755_v44, %v3287_v1  ;;  %v757_v50 = vpop.f32.mrb[1].mxu0  ;;  %v828_v51 = vpop.f32.mrb[1].mxu1  ;;  %v2676_v7 = vadd.f32 %v826_v46, %v3296_v3 }
 0x1d0   :  { %v2661_v52 = vadd.f32 %v757_v50, %v3289_v41  ;;  %v2677_v62 = vadd.f32 %v828_v51, %v3293_v59 }
 0x1d1   :  { %v2092_v17 = vmul.f32 -1.442695, %v2660_v16 }
 0x1d2   :  { %v2093_v57 = vmul.f32 -1.442695, %v2661_v52  ;;  %v2094_v5 = vmul.f32 -1.442695, %v2677_v62 }
 0x1d3   :  { %2776 = vpow2.f32 %v2092_v17 }
 0x1d4   :  { %2778 = vpow2.f32 %v2093_v57 }
 0x1d5   :  { %2780 = vpow2.f32 %v2094_v5 }
 0x1d6   :  { %2782 = vtanh.f32 %v2676_v7 }
 0x1dd   :  { %v2777_v10 = vpop.eup %2776 }
 0x1de   :  { %v2779_v14 = vpop.eup %2778  ;;  %v838_v15 = vadd.f32 1.0, %v2777_v10 }
 0x1df   :  { %v844_v20 = vadd.f32 1.0, %v2779_v14  ;;  %v2781_v22 = vpop.eup %2780 }
 0x1e0   :  { %2784 = vrcp.f32 %v838_v15  ;;  %v2783_v23 = vpop.eup %2782  ;;  %v851_v9 = vadd.f32 1.0, %v2781_v22 }
 0x1e1   :  { %2786 = vrcp.f32 %v844_v20 }
 0x1e2   :  { %2788 = vrcp.f32 %v851_v9 }
 0x1ea   :  { %v2785_v26 = vpop.eup %2784 }
 0x1eb   :  { %v2787_v0 = vpop.eup %2786  ;;  %v855_v32 = vmul.f32 %v2785_v26, %v2783_v23 }
 0x1ec   :  { %v854_v33 = vmul.f32 0.0, %v2787_v0  ;;  %v2789_v37 = vpop.eup %2788 }
 0x1ee   :  { %v3299_v34 = vadd.f32 %v855_v32, %v854_v33 }
 0x1f0   :  { %2790 = vtanh.f32 %v3299_v34 }
 0x1fa   :  { %v2791_v38 = vpop.eup %2790 }
 0x1fb   :  { %v858_v44 = vmul.f32 %v2791_v38, %v2789_v37 }
 0x1fd   :  { %924 = vmatmul.mubr.f32.vlgmr.msra.gmra.mrb[2].mxu0 %v858_v44  ;;  %995 = vmatmul.mubr.f32.vlgmr.msra.gmra.mrb[2].mxu1 %v858_v44 }
 0x1fe   :  { %2279 = vmatpush1.bf16.msra.mxu0 %v3108_v54  ;;  %2311 = vmatpush1.bf16.msra.mxu1 %v3112_v58 }
 0x1ff   :  { %2281 = vmatprep.subr.bf16.mxu0 %v3110_v55  ;;  %2313 = vmatprep.subr.bf16.mxu1 %v3127_v11 }
 0x200   :  { %1093 = vmatprep.mubr.f32.mxu0 %v2931_v47  ;;  %1164 = vmatprep.mubr.f32.mxu1 %v2931_v47 }
 0x202   :  { %2283 = vmatpush1.bf16.msra.mxu0 %v3120_v63  ;;  %2315 = vmatpush1.bf16.msra.mxu1 %v3137_v19 }
 0x203   :  { %2285 = vmatprep.subr.bf16.mxu0 %v3124_v4  ;;  %2317 = vmatprep.subr.bf16.mxu1 %v3142_v24 }
 0x206   :  { %2287 = vmatpush1.bf16.msra.mxu0 %v3135_v18  ;;  %2319 = vmatpush1.bf16.msra.mxu1 %v3152_v30 }
 0x207   :  { %2289 = vmatprep.subr.bf16.mxu0 %v3144_v25  ;;  %2321 = vmatprep.subr.bf16.mxu1 %v3160_v35 }
 0x20a   :  { %2291 = vmatpush1.bf16.msra.mxu0 %v3154_v31  ;;  %2323 = vmatpush1.bf16.msra.mxu1 %v3170_v42 }
 0x20b   :  { %2293 = vmatprep.subr.bf16.mxu0 %v3162_v36  ;;  %2325 = vmatprep.subr.bf16.mxu1 %v3178_v2 }
 0x20e   :  { %2295 = vmatpush1.bf16.msra.mxu0 %v3172_v43  ;;  %2327 = vmatpush1.bf16.msra.mxu1 %v3188_v53 }
 0x20f   :  { %2297 = vmatprep.subr.bf16.mxu0 %v3180_v48  ;;  %2329 = vmatprep.subr.bf16.mxu1 %v3196_v45 }
 0x212   :  { %2299 = vmatpush1.bf16.msra.mxu0 %v3192_v56  ;;  %2331 = vmatpush1.bf16.msra.mxu1 %v3206_v12 }
 0x213   :  { %2301 = vmatprep.subr.bf16.mxu0 %v3198_v60  ;;  %2333 = vmatprep.subr.bf16.mxu1 %v3214_v6 }
 0x216   :  { %2303 = vmatpush1.bf16.msra.mxu0 %v3210_v13  ;;  %2335 = vmatpush1.bf16.msra.mxu1 %v3224_v27 }
 0x217   :  { %2305 = vmatprep.subr.bf16.mxu0 %v3216_v21  ;;  %2337 = vmatprep.subr.bf16.mxu1 %v3230_v29 }
 0x21a   :  { %2307 = vmatpush1.bf16.msra.mxu0 %v3228_v28  ;;  %2339 = vmatpush1.bf16.msra.mxu1 %v3239_v8 }
 0x21b   :  { %2341 = vmatprep.subr.bf16.mxu0 %v3042_v39  ;;  %2373 = vmatprep.subr.bf16.mxu1 %v3044_v40 }
 0x2d0   :  { %v925_v46 = vpop.f32.mrb[2].mxu0  ;;  %v996_v49 = vpop.f32.mrb[2].mxu1 }
 0x2d1   :  { %v2662_v16 = vadd.f32 %v925_v46, %v3287_v1  ;;  %v927_v50 = vpop.f32.mrb[3].mxu0  ;;  %v998_v51 = vpop.f32.mrb[3].mxu1  ;;  %v2678_v5 = vadd.f32 %v996_v49, %v3296_v3 }
 0x2d2   :  { %v2663_v52 = vadd.f32 %v927_v50, %v3289_v41  ;;  %v2679_v61 = vadd.f32 %v998_v51, %v3293_v59 }
 0x2d3   :  { %v2095_v17 = vmul.f32 -1.442695, %v2662_v16 }
 0x2d4   :  { %v2096_v57 = vmul.f32 -1.442695, %v2663_v52  ;;  %v2097_v62 = vmul.f32 -1.442695, %v2679_v61 }
 0x2d5   :  { %2792 = vpow2.f32 %v2095_v17 }
 0x2d6   :  { %2794 = vpow2.f32 %v2096_v57 }
 0x2d7   :  { %2796 = vpow2.f32 %v2097_v62 }
 0x2d8   :  { %2798 = vtanh.f32 %v2678_v5 }
 0x2df   :  { %v2793_v7 = vpop.eup %2792 }
 0x2e0   :  { %v2795_v10 = vpop.eup %2794  ;;  %v1008_v14 = vadd.f32 1.0, %v2793_v7 }
 0x2e1   :  { %v1014_v15 = vadd.f32 1.0, %v2795_v10  ;;  %v2797_v20 = vpop.eup %2796 }
 0x2e2   :  { %2800 = vrcp.f32 %v1008_v14  ;;  %v2799_v22 = vpop.eup %2798  ;;  %v1021_v32 = vadd.f32 1.0, %v2797_v20 }
 0x2e3   :  { %2802 = vrcp.f32 %v1014_v15 }
 0x2e4   :  { %2804 = vrcp.f32 %v1021_v32 }
 0x2ec   :  { %v2801_v23 = vpop.eup %2800 }
 0x2ed   :  { %v2803_v26 = vpop.eup %2802  ;;  %v1025_v0 = vmul.f32 %v2801_v23, %v2799_v22 }
 0x2ee   :  { %v1024_v9 = vmul.f32 %v2803_v26, %v3299_v34  ;;  %v2805_v37 = vpop.eup %2804 }
 0x2f0   :  { %v3341_v33 = vadd.f32 %v1025_v0, %v1024_v9 }
 0x2f2   :  { %2806 = vtanh.f32 %v3341_v33 }
 0x2fc   :  { %v2807_v38 = vpop.eup %2806 }
 0x2fd   :  { %v1028_v44 = vmul.f32 %v2807_v38, %v2805_v37 }
 0x2ff   :  { %1094 = vmatmul.mubr.f32.vlgmr.msra.gmra.mrb[4].mxu0 %v1028_v44  ;;  %1165 = vmatmul.mubr.f32.vlgmr.msra.gmra.mrb[4].mxu1 %v1028_v44 }
 0x300   :  { %2343 = vmatpush1.bf16.msra.mxu0 %v3108_v54  ;;  %2375 = vmatpush1.bf16.msra.mxu1 %v3112_v58 }
 0x301   :  { %2345 = vmatprep.subr.bf16.mxu0 %v3110_v55  ;;  %2377 = vmatprep.subr.bf16.mxu1 %v3127_v11 }
 0x302   :  { %1263 = vmatprep.mubr.f32.mxu0 %v2931_v47  ;;  %1334 = vmatprep.mubr.f32.mxu1 %v2931_v47 }
 0x304   :  { %2347 = vmatpush1.bf16.msra.mxu0 %v3120_v63  ;;  %2379 = vmatpush1.bf16.msra.mxu1 %v3137_v19 }
 0x305   :  { %2349 = vmatprep.subr.bf16.mxu0 %v3124_v4  ;;  %2381 = vmatprep.subr.bf16.mxu1 %v3142_v24 }
 0x308   :  { %2351 = vmatpush1.bf16.msra.mxu0 %v3135_v18  ;;  %2383 = vmatpush1.bf16.msra.mxu1 %v3152_v30 }
 0x309   :  { %2353 = vmatprep.subr.bf16.mxu0 %v3144_v25  ;;  %2385 = vmatprep.subr.bf16.mxu1 %v3160_v35 }
 0x30c   :  { %2355 = vmatpush1.bf16.msra.mxu0 %v3154_v31  ;;  %2387 = vmatpush1.bf16.msra.mxu1 %v3170_v42 }
 0x30d   :  { %2357 = vmatprep.subr.bf16.mxu0 %v3162_v36  ;;  %2389 = vmatprep.subr.bf16.mxu1 %v3178_v2 }
 0x310   :  { %2359 = vmatpush1.bf16.msra.mxu0 %v3172_v43  ;;  %2391 = vmatpush1.bf16.msra.mxu1 %v3188_v53 }
 0x311   :  { %2361 = vmatprep.subr.bf16.mxu0 %v3180_v48  ;;  %2393 = vmatprep.subr.bf16.mxu1 %v3196_v45 }
 0x314   :  { %2363 = vmatpush1.bf16.msra.mxu0 %v3192_v56  ;;  %2395 = vmatpush1.bf16.msra.mxu1 %v3206_v12 }
 0x315   :  { %2365 = vmatprep.subr.bf16.mxu0 %v3198_v60  ;;  %2397 = vmatprep.subr.bf16.mxu1 %v3214_v6 }
 0x318   :  { %2367 = vmatpush1.bf16.msra.mxu0 %v3210_v13  ;;  %2399 = vmatpush1.bf16.msra.mxu1 %v3224_v27 }
 0x319   :  { %2369 = vmatprep.subr.bf16.mxu0 %v3216_v21  ;;  %2401 = vmatprep.subr.bf16.mxu1 %v3230_v29 }
 0x31c   :  { %2371 = vmatpush1.bf16.msra.mxu0 %v3228_v28  ;;  %2403 = vmatpush1.bf16.msra.mxu1 %v3239_v8 }
 0x31d   :  { %2405 = vmatprep.subr.bf16.mxu0 %v3042_v39  ;;  %2437 = vmatprep.subr.bf16.mxu1 %v3044_v40 }
 0x3d2   :  { %v1095_v34 = vpop.f32.mrb[4].mxu0  ;;  %v1166_v46 = vpop.f32.mrb[4].mxu1 }
 0x3d3   :  { %v2664_v49 = vadd.f32 %v1095_v34, %v3287_v1  ;;  %v1097_v16 = vpop.f32.mrb[5].mxu0  ;;  %v1168_v50 = vpop.f32.mrb[5].mxu1  ;;  %v2680_v62 = vadd.f32 %v1166_v46, %v3296_v3 }
 0x3d4   :  { %v2665_v51 = vadd.f32 %v1097_v16, %v3289_v41  ;;  %v2681_v57 = vadd.f32 %v1168_v50, %v3293_v59 }
 0x3d5   :  { %v2098_v52 = vmul.f32 -1.442695, %v2664_v49 }
 0x3d6   :  { %v2099_v17 = vmul.f32 -1.442695, %v2665_v51  ;;  %v2100_v61 = vmul.f32 -1.442695, %v2681_v57 }
 0x3d7   :  { %2808 = vpow2.f32 %v2098_v52 }
 0x3d8   :  { %2810 = vpow2.f32 %v2099_v17 }
 0x3d9   :  { %2812 = vpow2.f32 %v2100_v61 }
 0x3da   :  { %2814 = vtanh.f32 %v2680_v62 }
 0x3e1   :  { %v2809_v5 = vpop.eup %2808 }
 0x3e2   :  { %v2811_v7 = vpop.eup %2810  ;;  %v1178_v10 = vadd.f32 1.0, %v2809_v5 }
 0x3e3   :  { %v1184_v14 = vadd.f32 1.0, %v2811_v7  ;;  %v2813_v15 = vpop.eup %2812 }
 0x3e4   :  { %2816 = vrcp.f32 %v1178_v10  ;;  %v2815_v20 = vpop.eup %2814  ;;  %v1191_v0 = vadd.f32 1.0, %v2813_v15 }
 0x3e5   :  { %2818 = vrcp.f32 %v1184_v14 }
 0x3e6   :  { %2820 = vrcp.f32 %v1191_v0 }
 0x3ee   :  { %v2817_v22 = vpop.eup %2816 }
 0x3ef   :  { %v2819_v23 = vpop.eup %2818  ;;  %v1195_v26 = vmul.f32 %v2817_v22, %v2815_v20 }
 0x3f0   :  { %v1194_v32 = vmul.f32 %v2819_v23, %v3341_v33  ;;  %v2821_v37 = vpop.eup %2820 }
 0x3f2   :  { %v3383_v9 = vadd.f32 %v1195_v26, %v1194_v32 }
 0x3f4   :  { %2822 = vtanh.f32 %v3383_v9 }
 0x3fe   :  { %v2823_v38 = vpop.eup %2822 }
 0x3ff   :  { %v1198_v44 = vmul.f32 %v2823_v38, %v2821_v37 }
 0x401   :  { %1264 = vmatmul.mubr.f32.vlgmr.msra.gmra.mrb[6].mxu0 %v1198_v44  ;;  %1335 = vmatmul.mubr.f32.vlgmr.msra.gmra.mrb[6].mxu1 %v1198_v44 }
 0x402   :  { %2407 = vmatpush1.bf16.msra.mxu0 %v3108_v54  ;;  %2439 = vmatpush1.bf16.msra.mxu1 %v3112_v58 }
 0x403   :  { %2409 = vmatprep.subr.bf16.mxu0 %v3110_v55  ;;  %2441 = vmatprep.subr.bf16.mxu1 %v3127_v11 }
 0x404   :  { %1433 = vmatprep.mubr.f32.mxu0 %v2931_v47  ;;  %1504 = vmatprep.mubr.f32.mxu1 %v2931_v47 }
 0x406   :  { %2411 = vmatpush1.bf16.msra.mxu0 %v3120_v63  ;;  %2443 = vmatpush1.bf16.msra.mxu1 %v3137_v19 }
 0x407   :  { %2413 = vmatprep.subr.bf16.mxu0 %v3124_v4  ;;  %2445 = vmatprep.subr.bf16.mxu1 %v3142_v24 }
 0x40a   :  { %2415 = vmatpush1.bf16.msra.mxu0 %v3135_v18  ;;  %2447 = vmatpush1.bf16.msra.mxu1 %v3152_v30 }
 0x40b   :  { %2417 = vmatprep.subr.bf16.mxu0 %v3144_v25  ;;  %2449 = vmatprep.subr.bf16.mxu1 %v3160_v35 }
 0x40e   :  { %2419 = vmatpush1.bf16.msra.mxu0 %v3154_v31  ;;  %2451 = vmatpush1.bf16.msra.mxu1 %v3170_v42 }
 0x40f   :  { %2421 = vmatprep.subr.bf16.mxu0 %v3162_v36  ;;  %2453 = vmatprep.subr.bf16.mxu1 %v3178_v2 }
 0x412   :  { %2423 = vmatpush1.bf16.msra.mxu0 %v3172_v43  ;;  %2455 = vmatpush1.bf16.msra.mxu1 %v3188_v53 }
 0x413   :  { %2425 = vmatprep.subr.bf16.mxu0 %v3180_v48  ;;  %2457 = vmatprep.subr.bf16.mxu1 %v3196_v45 }
 0x416   :  { %2427 = vmatpush1.bf16.msra.mxu0 %v3192_v56  ;;  %2459 = vmatpush1.bf16.msra.mxu1 %v3206_v12 }
 0x417   :  { %2429 = vmatprep.subr.bf16.mxu0 %v3198_v60  ;;  %2461 = vmatprep.subr.bf16.mxu1 %v3214_v6 }
 0x41a   :  { %2431 = vmatpush1.bf16.msra.mxu0 %v3210_v13  ;;  %2463 = vmatpush1.bf16.msra.mxu1 %v3224_v27 }
 0x41b   :  { %2433 = vmatprep.subr.bf16.mxu0 %v3216_v21  ;;  %2465 = vmatprep.subr.bf16.mxu1 %v3230_v29 }
 0x41e   :  { %2435 = vmatpush1.bf16.msra.mxu0 %v3228_v28  ;;  %2467 = vmatpush1.bf16.msra.mxu1 %v3239_v8 }
 0x41f   :  { %2469 = vmatprep.subr.bf16.mxu0 %v3042_v39  ;;  %2501 = vmatprep.subr.bf16.mxu1 %v3044_v40 }
 0x4d4   :  { %v1265_v33 = vpop.f32.mrb[6].mxu0  ;;  %v1336_v34 = vpop.f32.mrb[6].mxu1 }
 0x4d5   :  { %v2666_v46 = vadd.f32 %v1265_v33, %v3287_v1  ;;  %v1267_v49 = vpop.f32.mrb[7].mxu0  ;;  %v1338_v16 = vpop.f32.mrb[7].mxu1  ;;  %v2682_v61 = vadd.f32 %v1336_v34, %v3296_v3 }
 0x4d6   :  { %v2667_v50 = vadd.f32 %v1267_v49, %v3289_v41  ;;  %v2683_v17 = vadd.f32 %v1338_v16, %v3293_v59 }
 0x4d7   :  { %v2101_v51 = vmul.f32 -1.442695, %v2666_v46 }
 0x4d8   :  { %v2102_v52 = vmul.f32 -1.442695, %v2667_v50  ;;  %v2103_v57 = vmul.f32 -1.442695, %v2683_v17 }
 0x4d9   :  { %2824 = vpow2.f32 %v2101_v51 }
 0x4da   :  { %2826 = vpow2.f32 %v2102_v52 }
 0x4db   :  { %2828 = vpow2.f32 %v2103_v57 }
 0x4dc   :  { %2830 = vtanh.f32 %v2682_v61 }
 0x4e3   :  { %v2825_v62 = vpop.eup %2824 }
 0x4e4   :  { %v2827_v5 = vpop.eup %2826  ;;  %v1348_v7 = vadd.f32 1.0, %v2825_v62 }
 0x4e5   :  { %v1354_v10 = vadd.f32 1.0, %v2827_v5  ;;  %v2829_v14 = vpop.eup %2828 }
 0x4e6   :  { %2832 = vrcp.f32 %v1348_v7  ;;  %v2831_v15 = vpop.eup %2830  ;;  %v1361_v26 = vadd.f32 1.0, %v2829_v14 }
 0x4e7   :  { %2834 = vrcp.f32 %v1354_v10 }
 0x4e8   :  { %2836 = vrcp.f32 %v1361_v26 }
 0x4f0   :  { %v2833_v20 = vpop.eup %2832 }
 0x4f1   :  { %v2835_v22 = vpop.eup %2834  ;;  %v1365_v23 = vmul.f32 %v2833_v20, %v2831_v15 }
 0x4f2   :  { %v1364_v0 = vmul.f32 %v2835_v22, %v3383_v9  ;;  %v2837_v37 = vpop.eup %2836 }
 0x4f4   :  { %v3425_v32 = vadd.f32 %v1365_v23, %v1364_v0 }
 0x4f6   :  { %2838 = vtanh.f32 %v3425_v32 }
 0x500   :  { %v2839_v38 = vpop.eup %2838 }
 0x501   :  { %v1368_v44 = vmul.f32 %v2839_v38, %v2837_v37 }
 0x503   :  { %1434 = vmatmul.mubr.f32.vlgmr.msra.gmra.mrb[8].mxu0 %v1368_v44  ;;  %1505 = vmatmul.mubr.f32.vlgmr.msra.gmra.mrb[8].mxu1 %v1368_v44 }
 0x504   :  { %2471 = vmatpush1.bf16.msra.mxu0 %v3108_v54  ;;  %2503 = vmatpush1.bf16.msra.mxu1 %v3112_v58 }
 0x505   :  { %2473 = vmatprep.subr.bf16.mxu0 %v3110_v55  ;;  %2505 = vmatprep.subr.bf16.mxu1 %v3127_v11 }
 0x506   :  { %1603 = vmatprep.mubr.f32.mxu0 %v2931_v47  ;;  %1674 = vmatprep.mubr.f32.mxu1 %v2931_v47 }
 0x508   :  { %2475 = vmatpush1.bf16.msra.mxu0 %v3120_v63  ;;  %2507 = vmatpush1.bf16.msra.mxu1 %v3137_v19 }
 0x509   :  { %2477 = vmatprep.subr.bf16.mxu0 %v3124_v4  ;;  %2509 = vmatprep.subr.bf16.mxu1 %v3142_v24 }
 0x50c   :  { %2479 = vmatpush1.bf16.msra.mxu0 %v3135_v18  ;;  %2511 = vmatpush1.bf16.msra.mxu1 %v3152_v30 }
 0x50d   :  { %2481 = vmatprep.subr.bf16.mxu0 %v3144_v25  ;;  %2513 = vmatprep.subr.bf16.mxu1 %v3160_v35 }
 0x510   :  { %2483 = vmatpush1.bf16.msra.mxu0 %v3154_v31  ;;  %2515 = vmatpush1.bf16.msra.mxu1 %v3170_v42 }
 0x511   :  { %2485 = vmatprep.subr.bf16.mxu0 %v3162_v36  ;;  %2517 = vmatprep.subr.bf16.mxu1 %v3178_v2 }
 0x514   :  { %2487 = vmatpush1.bf16.msra.mxu0 %v3172_v43  ;;  %2519 = vmatpush1.bf16.msra.mxu1 %v3188_v53 }
 0x515   :  { %2489 = vmatprep.subr.bf16.mxu0 %v3180_v48  ;;  %2521 = vmatprep.subr.bf16.mxu1 %v3196_v45 }
 0x518   :  { %2491 = vmatpush1.bf16.msra.mxu0 %v3192_v56  ;;  %2523 = vmatpush1.bf16.msra.mxu1 %v3206_v12 }
 0x519   :  { %2493 = vmatprep.subr.bf16.mxu0 %v3198_v60  ;;  %2525 = vmatprep.subr.bf16.mxu1 %v3214_v6 }
 0x51c   :  { %2495 = vmatpush1.bf16.msra.mxu0 %v3210_v13  ;;  %2527 = vmatpush1.bf16.msra.mxu1 %v3224_v27 }
 0x51d   :  { %2497 = vmatprep.subr.bf16.mxu0 %v3216_v21  ;;  %2529 = vmatprep.subr.bf16.mxu1 %v3230_v29 }
 0x520   :  { %2499 = vmatpush1.bf16.msra.mxu0 %v3228_v28  ;;  %2531 = vmatpush1.bf16.msra.mxu1 %v3239_v8 }
 0x521   :  { %2533 = vmatprep.subr.bf16.mxu0 %v3042_v39  ;;  %2565 = vmatprep.subr.bf16.mxu1 %v3044_v40 }
 0x5d6   :  { %v1435_v9 = vpop.f32.mrb[8].mxu0  ;;  %v1506_v33 = vpop.f32.mrb[8].mxu1 }
 0x5d7   :  { %v2668_v34 = vadd.f32 %v1435_v9, %v3287_v1  ;;  %v1437_v46 = vpop.f32.mrb[9].mxu0  ;;  %v1508_v49 = vpop.f32.mrb[9].mxu1  ;;  %v2684_v57 = vadd.f32 %v1506_v33, %v3296_v3 }
 0x5d8   :  { %v2669_v16 = vadd.f32 %v1437_v46, %v3289_v41  ;;  %v2685_v52 = vadd.f32 %v1508_v49, %v3293_v59 }
 0x5d9   :  { %v2104_v50 = vmul.f32 -1.442695, %v2668_v34 }
 0x5da   :  { %v2105_v51 = vmul.f32 -1.442695, %v2669_v16  ;;  %v2106_v17 = vmul.f32 -1.442695, %v2685_v52 }
 0x5db   :  { %2840 = vpow2.f32 %v2104_v50 }
 0x5dc   :  { %2842 = vpow2.f32 %v2105_v51 }
 0x5dd   :  { %2844 = vpow2.f32 %v2106_v17 }
 0x5de   :  { %2846 = vtanh.f32 %v2684_v57 }
 0x5e5   :  { %v2841_v61 = vpop.eup %2840 }
 0x5e6   :  { %v2843_v62 = vpop.eup %2842  ;;  %v1518_v5 = vadd.f32 1.0, %v2841_v61 }
 0x5e7   :  { %v1524_v7 = vadd.f32 1.0, %v2843_v62  ;;  %v2845_v10 = vpop.eup %2844 }
 0x5e8   :  { %2848 = vrcp.f32 %v1518_v5  ;;  %v2847_v14 = vpop.eup %2846  ;;  %v1531_v23 = vadd.f32 1.0, %v2845_v10 }
 0x5e9   :  { %2850 = vrcp.f32 %v1524_v7 }
 0x5ea   :  { %2852 = vrcp.f32 %v1531_v23 }
 0x5f2   :  { %v2849_v15 = vpop.eup %2848 }
 0x5f3   :  { %v2851_v20 = vpop.eup %2850  ;;  %v1535_v22 = vmul.f32 %v2849_v15, %v2847_v14 }
 0x5f4   :  { %v1534_v26 = vmul.f32 %v2851_v20, %v3425_v32  ;;  %v2853_v37 = vpop.eup %2852 }
 0x5f6   :  { %v3467_v0 = vadd.f32 %v1535_v22, %v1534_v26 }
 0x5f8   :  { %2854 = vtanh.f32 %v3467_v0 }
 0x602   :  { %v2855_v38 = vpop.eup %2854 }
 0x603   :  { %v1538_v44 = vmul.f32 %v2855_v38, %v2853_v37 }
 0x605   :  { %1604 = vmatmul.mubr.f32.vlgmr.msra.gmra.mrb[10].mxu0 %v1538_v44  ;;  %1675 = vmatmul.mubr.f32.vlgmr.msra.gmra.mrb[10].mxu1 %v1538_v44 }
 0x606   :  { %2535 = vmatpush1.bf16.msra.mxu0 %v3108_v54  ;;  %2567 = vmatpush1.bf16.msra.mxu1 %v3112_v58 }
 0x607   :  { %2537 = vmatprep.subr.bf16.mxu0 %v3110_v55  ;;  %2569 = vmatprep.subr.bf16.mxu1 %v3127_v11 }
 0x608   :  { %1773 = vmatprep.mubr.f32.mxu0 %v2931_v47  ;;  %1844 = vmatprep.mubr.f32.mxu1 %v2931_v47 }
 0x60a   :  { %2539 = vmatpush1.bf16.msra.mxu0 %v3120_v63  ;;  %2571 = vmatpush1.bf16.msra.mxu1 %v3137_v19 }
 0x60b   :  { %2541 = vmatprep.subr.bf16.mxu0 %v3124_v4  ;;  %2573 = vmatprep.subr.bf16.mxu1 %v3142_v24 }
 0x60e   :  { %2543 = vmatpush1.bf16.msra.mxu0 %v3135_v18  ;;  %2575 = vmatpush1.bf16.msra.mxu1 %v3152_v30 }
 0x60f   :  { %2545 = vmatprep.subr.bf16.mxu0 %v3144_v25  ;;  %2577 = vmatprep.subr.bf16.mxu1 %v3160_v35 }
 0x612   :  { %2547 = vmatpush1.bf16.msra.mxu0 %v3154_v31  ;;  %2579 = vmatpush1.bf16.msra.mxu1 %v3170_v42 }
 0x613   :  { %2549 = vmatprep.subr.bf16.mxu0 %v3162_v36  ;;  %2581 = vmatprep.subr.bf16.mxu1 %v3178_v2 }
 0x616   :  { %2551 = vmatpush1.bf16.msra.mxu0 %v3172_v43  ;;  %2583 = vmatpush1.bf16.msra.mxu1 %v3188_v53 }
 0x617   :  { %2553 = vmatprep.subr.bf16.mxu0 %v3180_v48  ;;  %2585 = vmatprep.subr.bf16.mxu1 %v3196_v45 }
 0x61a   :  { %2555 = vmatpush1.bf16.msra.mxu0 %v3192_v56  ;;  %2587 = vmatpush1.bf16.msra.mxu1 %v3206_v12 }
 0x61b   :  { %2557 = vmatprep.subr.bf16.mxu0 %v3198_v60  ;;  %2589 = vmatprep.subr.bf16.mxu1 %v3214_v6 }
 0x61e   :  { %2559 = vmatpush1.bf16.msra.mxu0 %v3210_v13  ;;  %2591 = vmatpush1.bf16.msra.mxu1 %v3224_v27 }
 0x61f   :  { %2561 = vmatprep.subr.bf16.mxu0 %v3216_v21  ;;  %2593 = vmatprep.subr.bf16.mxu1 %v3230_v29 }
 0x622   :  { %2563 = vmatpush1.bf16.msra.mxu0 %v3228_v28  ;;  %2595 = vmatpush1.bf16.msra.mxu1 %v3239_v8 }
 0x623   :  { %2597 = vmatprep.subr.bf16.mxu0 %v3042_v39  ;;  %2629 = vmatprep.subr.bf16.mxu1 %v3044_v40 }
 0x6d8   :  { %v1605_v32 = vpop.f32.mrb[10].mxu0  ;;  %v1676_v9 = vpop.f32.mrb[10].mxu1 }
 0x6d9   :  { %v2670_v33 = vadd.f32 %v1605_v32, %v3287_v1  ;;  %v1607_v34 = vpop.f32.mrb[11].mxu0  ;;  %v1678_v46 = vpop.f32.mrb[11].mxu1  ;;  %v2686_v17 = vadd.f32 %v1676_v9, %v3296_v3 }
 0x6da   :  { %v2671_v49 = vadd.f32 %v1607_v34, %v3289_v41  ;;  %v2687_v51 = vadd.f32 %v1678_v46, %v3293_v59 }
 0x6db   :  { %v2107_v16 = vmul.f32 -1.442695, %v2670_v33 }
 0x6dc   :  { %v2108_v50 = vmul.f32 -1.442695, %v2671_v49  ;;  %v2109_v52 = vmul.f32 -1.442695, %v2687_v51 }
 0x6dd   :  { %2856 = vpow2.f32 %v2107_v16 }
 0x6de   :  { %2858 = vpow2.f32 %v2108_v50 }
 0x6df   :  { %2860 = vpow2.f32 %v2109_v52 }
 0x6e0   :  { %2862 = vtanh.f32 %v2686_v17 }
 0x6e7   :  { %v2857_v39 = vpop.eup %2856 }
 0x6e8   :  { %v2859_v57 = vpop.eup %2858  ;;  %v1688_v40 = vadd.f32 1.0, %v2857_v39 }
 0x6e9   :  { %v1694_v61 = vadd.f32 1.0, %v2859_v57  ;;  %v2861_v62 = vpop.eup %2860 }
 0x6ea   :  { %2864 = vrcp.f32 %v1688_v40  ;;  %v2863_v5 = vpop.eup %2862  ;;  %v1701_v15 = vadd.f32 1.0, %v2861_v62  ;;  %v190_v40 = vld [vmem:[%s3564_s2 + $0x1] ss:$0 sm:$0xff] }
 0x6eb   :  { %2866 = vrcp.f32 %v1694_v61 }
 0x6ec   :  { %2868 = vrcp.f32 %v1701_v15 }
 0x6f4   :  { %v2865_v7 = vpop.eup %2864 }
 0x6f5   :  { %v2867_v10 = vpop.eup %2866  ;;  %v1705_v14 = vmul.f32 %v2865_v7, %v2863_v5  ;;  %v191_v5 = vld [vmem:[%s3564_s2 + $0x2] ss:$0 sm:$0xff] }
 0x6f6   :  { %v1704_v20 = vmul.f32 %v2867_v10, %v3467_v0  ;;  %v2869_v23 = vpop.eup %2868 }
 0x6f8   :  { %v3509_v22 = vadd.f32 %v1705_v14, %v1704_v20 }
 0x6fa   :  { %2870 = vtanh.f32 %v3509_v22 }
 0x704   :  { %v2871_v26 = vpop.eup %2870 }
 0x705   :  { %v1708_v37 = vmul.f32 %v2871_v26, %v2869_v23 }
 0x707   :  { %1774 = vmatmul.mubr.f32.vlgmr.msra.gmra.mrb[12].mxu0 %v1708_v37  ;;  %1845 = vmatmul.mubr.f32.vlgmr.msra.gmra.mrb[12].mxu1 %v1708_v37 }
 0x708   :  { %2599 = vmatpush1.bf16.msra.mxu0 %v3108_v54  ;;  %2631 = vmatpush1.bf16.msra.mxu1 %v3112_v58 }
 0x709   :  { %2601 = vmatprep.subr.bf16.mxu0 %v3110_v55  ;;  %2633 = vmatprep.subr.bf16.mxu1 %v3127_v11 }
 0x70a   :  { %1943 = vmatprep.mubr.f32.mxu0 %v2931_v47  ;;  %2014 = vmatprep.mubr.f32.mxu1 %v2931_v47 }
 0x70c   :  { %2603 = vmatpush1.bf16.msra.mxu0 %v3120_v63  ;;  %2635 = vmatpush1.bf16.msra.mxu1 %v3137_v19 }
 0x70d   :  { %2605 = vmatprep.subr.bf16.mxu0 %v3124_v4  ;;  %2637 = vmatprep.subr.bf16.mxu1 %v3142_v24 }
 0x710   :  { %2607 = vmatpush1.bf16.msra.mxu0 %v3135_v18  ;;  %2639 = vmatpush1.bf16.msra.mxu1 %v3152_v30 }
 0x711   :  { %2609 = vmatprep.subr.bf16.mxu0 %v3144_v25  ;;  %2641 = vmatprep.subr.bf16.mxu1 %v3160_v35 }
 0x714   :  { %2611 = vmatpush1.bf16.msra.mxu0 %v3154_v31  ;;  %2643 = vmatpush1.bf16.msra.mxu1 %v3170_v42 }
 0x715   :  { %2613 = vmatprep.subr.bf16.mxu0 %v3162_v36  ;;  %2645 = vmatprep.subr.bf16.mxu1 %v3178_v2 }
 0x718   :  { %2615 = vmatpush1.bf16.msra.mxu0 %v3172_v43  ;;  %2647 = vmatpush1.bf16.msra.mxu1 %v3188_v53 }
 0x719   :  { %2617 = vmatprep.subr.bf16.mxu0 %v3180_v48  ;;  %2649 = vmatprep.subr.bf16.mxu1 %v3196_v45 }
 0x71c   :  { %2619 = vmatpush1.bf16.msra.mxu0 %v3192_v56  ;;  %2651 = vmatpush1.bf16.msra.mxu1 %v3206_v12 }
 0x71d   :  { %2621 = vmatprep.subr.bf16.mxu0 %v3198_v60  ;;  %2653 = vmatprep.subr.bf16.mxu1 %v3214_v6 }
 0x720   :  { %2623 = vmatpush1.bf16.msra.mxu0 %v3210_v13  ;;  %2655 = vmatpush1.bf16.msra.mxu1 %v3224_v27 }
 0x721   :  { %2625 = vmatprep.subr.bf16.mxu0 %v3216_v21  ;;  %2657 = vmatprep.subr.bf16.mxu1 %v3230_v29 }
 0x724   :  { %2627 = vmatpush1.bf16.msra.mxu0 %v3228_v28  ;;  %2659 = vmatpush1.bf16.msra.mxu1 %v3239_v8 }
 0x7da   :  { %v1775_v47 = vpop.f32.mrb[12].mxu0  ;;  %v1846_v54 = vpop.f32.mrb[12].mxu1 }
 0x7db   :  { %v2672_v55 = vadd.f32 %v1775_v47, %v3287_v1  ;;  %v1777_v58 = vpop.f32.mrb[13].mxu0  ;;  %v1848_v63 = vpop.f32.mrb[13].mxu1  ;;  %v2688_v25 = vadd.f32 %v1846_v54, %v3296_v3 }
 0x7dc   :  { %v2673_v4 = vadd.f32 %v1777_v58, %v3289_v41  ;;  %v2689_v19 = vadd.f32 %v1848_v63, %v3293_v59 }
 0x7dd   :  { %v2110_v11 = vmul.f32 -1.442695, %v2672_v55 }
 0x7de   :  { %v2111_v18 = vmul.f32 -1.442695, %v2673_v4  ;;  %v2112_v24 = vmul.f32 -1.442695, %v2689_v19 }
 0x7df   :  { %2872 = vpow2.f32 %v2110_v11 }
 0x7e0   :  { %2874 = vpow2.f32 %v2111_v18 }
 0x7e1   :  { %2876 = vpow2.f32 %v2112_v24 }
 0x7e2   :  { %2878 = vtanh.f32 %v2688_v25 }
 0x7e9   :  { %v2873_v30 = vpop.eup %2872 }
 0x7ea   :  { %v2875_v31 = vpop.eup %2874  ;;  %v1858_v35 = vadd.f32 1.0, %v2873_v30 }
 0x7eb   :  { %v1864_v36 = vadd.f32 1.0, %v2875_v31  ;;  %v2877_v42 = vpop.eup %2876 }
 0x7ec   :  { %2880 = vrcp.f32 %v1858_v35  ;;  %v2879_v43 = vpop.eup %2878  ;;  %v1871_v56 = vadd.f32 1.0, %v2877_v42 }
 0x7ed   :  { %2882 = vrcp.f32 %v1864_v36 }
 0x7ee   :  { %2884 = vrcp.f32 %v1871_v56 }
 0x7f6   :  { %v2881_v2 = vpop.eup %2880 }
 0x7f7   :  { %v2883_v48 = vpop.eup %2882  ;;  %v1875_v53 = vmul.f32 %v2881_v2, %v2879_v43 }
 0x7f8   :  { %v1874_v45 = vmul.f32 %v2883_v48, %v3509_v22  ;;  %v2885_v12 = vpop.eup %2884 }
 0x7fa   :  { %v1876_v60 = vadd.f32 %v1875_v53, %v1874_v45 }
 0x7fc   :  { %2886 = vtanh.f32 %v1876_v60 }
 0x806   :  { %v2887_v13 = vpop.eup %2886 }
 0x807   :  { %v1878_v6 = vmul.f32 %v2887_v13, %v2885_v12 }
 0x809   :  { %1944 = vmatmul.mubr.f32.vlgmr.msra.gmra.mrb[14].mxu0 %v1878_v6  ;;  %2015 = vmatmul.mubr.f32.vlgmr.msra.gmra.mrb[14].mxu1 %v1878_v6 }
 0x8dc   :  { %v1945_v21 = vpop.f32.mrb[14].mxu0  ;;  %v2016_v27 = vpop.f32.mrb[14].mxu1 }
 0x8dd   :  { %v2674_v28 = vadd.f32 %v1945_v21, %v3287_v1  ;;  %v1947_v29 = vpop.f32.mrb[15].mxu0  ;;  %v2018_v8 = vpop.f32.mrb[15].mxu1  ;;  %v2690_v33 = vadd.f32 %v2016_v27, %v3296_v3 }
 0x8de   :  { %v2675_v0 = vadd.f32 %v1947_v29, %v3289_v41  ;;  %v2691_v32 = vadd.f32 %v2018_v8, %v3293_v59 }
 0x8df   :  { %v2113_v38 = vmul.f32 -1.442695, %v2674_v28 }
 0x8e0   :  { %v2114_v44 = vmul.f32 -1.442695, %v2675_v0  ;;  %v2115_v9 = vmul.f32 -1.442695, %v2691_v32 }
 0x8e1   :  { %2888 = vpow2.f32 %v2113_v38 }
 0x8e2   :  { %2890 = vpow2.f32 %v2114_v44 }
 0x8e3   :  { %2892 = vpow2.f32 %v2115_v9 }
 0x8e4   :  { %2894 = vtanh.f32 %v2690_v33 }
 0x8eb   :  { %v2889_v34 = vpop.eup %2888 }
 0x8ec   :  { %v2891_v46 = vpop.eup %2890  ;;  %v2028_v49 = vadd.f32 1.0, %v2889_v34 }
 0x8ed   :  { %v2034_v16 = vadd.f32 1.0, %v2891_v46  ;;  %v2893_v1 = vpop.eup %2892 }
 0x8ee   :  { %2896 = vrcp.f32 %v2028_v49  ;;  %v2895_v50 = vpop.eup %2894  ;;  %v2041_v17 = vadd.f32 1.0, %v2893_v1 }
 0x8ef   :  { %2898 = vrcp.f32 %v2034_v16 }
 0x8f0   :  { %2900 = vrcp.f32 %v2041_v17 }
 0x8f8   :  { %v2897_v41 = vpop.eup %2896 }
 0x8f9   :  { %v2899_v51 = vpop.eup %2898  ;;  %v2045_v52 = vmul.f32 %v2897_v41, %v2895_v50 }
 0x8fa   :  { %v2044_v39 = vmul.f32 %v2899_v51, %v1876_v60  ;;  %v2901_v59 = vpop.eup %2900 }
 0x8fc   :  { %v2046_v57 = vadd.f32 %v2045_v52, %v2044_v39 }
 0x8fe   :  { %2902 = vtanh.f32 %v2046_v57 }
 0x908   :  { %v2903_v3 = vpop.eup %2902 }
 0x909   :  { %v2048_v61 = vmul.f32 %v2903_v3, %v2901_v59 }
 0x90b   :  { %v2049_v62 = vmul.f32 %v2048_v61, %v190_v40 }
 0x90d   :  { %2050 = vadd.xlane.f32.xlu0 %v2049_v62 }
 0x99a   :  { %v2051_v7 = vpop.xlane.xlu0 %2050 }
 0x99b   :  { %v2052_v10 = vadd.f32 %v2051_v7, %v191_v5 }
 0x99d   :  { %2054 = vst.msk [vmem:[%s3565_s3] sm:$0xff] %vm2053_vm1, %v2052_v10 }
 0x99e   :  { %2059 = vsyncpa [#allocation3], 1 }

</bundles_post_ra>
